<compile_context>
chip_gen: v6e
topology: v6e:2x2x1
jax: 0.10.0
libtpu: 0.0.40
codegen_flags: <defaults>
</compile_context>

<pallas_src>
import functools

import jax
import jax.numpy as jnp
from jax import lax
from jax.experimental import pallas as pl
from jax.experimental.pallas import tpu as pltpu

L = 10                  # sequence length (module repeats the feature vector L times)
MIDDLE = 256
HIDDEN = MIDDLE // 4    # 64
OUT_PAD = 128           # nn3 output lanes padded to a full vreg lane width


def _leaky_relu(x, slope=0.01):
    return jnp.where(x >= 0, x, slope * x)


def _round_up(x, m):
    return (x + m - 1) // m * m


def lstm_kernel(x_ref, w1_ref, b1_ref, w2_ref, b2_ref,
                wih_ref, whh_ref, bg_ref, w3_ref, b3_ref,
                out_ref, h_all_ref):
    bt = x_ref.shape[0]                      # batch-tile rows (static, multiple of 8)

    # --- MLP front-end (once per batch tile, off the recurrent chain) ---
    x = x_ref[...]
    h1 = _leaky_relu(jnp.dot(x, w1_ref[...],
                             preferred_element_type=jnp.float32) + b1_ref[...])
    h2 = _leaky_relu(jnp.dot(h1, w2_ref[...],
                             preferred_element_type=jnp.float32) + b2_ref[...])

    # Timestep-invariant input contribution (x.unsqueeze(1).repeat(1, L, 1) in torch)
    # with (bih + bhh) pre-folded; unpadded (bt, 256).
    gates_x = (jnp.dot(h2, wih_ref[...], preferred_element_type=jnp.float32)
               + bg_ref[...])

    whh = whh_ref[...]                       # (64, 256), hoisted out of the loop
    # TODO(synk): cast matmul operands to bf16 (keeping preferred_element_type=f32)
    #             for guaranteed single-pass MXU once the 2e-3 validation tolerance
    #             is relaxed; kept f32 here for exact agreement with the reference.

    def gate_math(gates, c_prev):
        i_g = jax.nn.sigmoid(gates[:, 0 * HIDDEN:1 * HIDDEN])
        f_g = jax.nn.sigmoid(gates[:, 1 * HIDDEN:2 * HIDDEN])
        g_g = jnp.tanh(gates[:, 2 * HIDDEN:3 * HIDDEN])
        o_g = jax.nn.sigmoid(gates[:, 3 * HIDDEN:4 * HIDDEN])
        c = f_g * c_prev + i_g * g_g
        h = o_g * jnp.tanh(c)
        return h, c

    # --- t = 0 peeled: h == 0, so gates == gates_x (no whh matmul on the chain) ---
    h, c = gate_math(gates_x, jnp.zeros((bt, HIDDEN), jnp.float32))
    h_all_ref[0:bt, :] = h

    # --- remaining timesteps: only the (bt,64)@(64,256) whh matmul + gate math sit
    #     on the serial chain.  fori_loop(unroll=True) keeps LLO visibility while
    #     bounding live ranges (a plain Python unroll keeps all 9 steps live). ---
    # TODO(synk): on v6e/v7x keep whh resident in MXU weight registers across all
    #             timesteps via pltpu.matmul_push_rhs / matmul_acc_lhs / matmul_pop
    #             (with in-place MRB accumulation of gates_x on v7x).
    def step(t, carry):
        h, c = carry
        gates = gates_x + jnp.dot(h, whh, preferred_element_type=jnp.float32)
        h, c = gate_math(gates, c)
        row = pl.multiple_of(t * bt, 8)
        h_all_ref[pl.ds(row, bt), :] = h
        return h, c

    lax.fori_loop(1, L, step, (h, c), unroll=True)

    # --- epilogue: ONE fused nn3 projection over all timesteps (lanes padded to
    #     128), then L static, lane-dense (bt, 128) stores into the batch-major
    #     (bt, L*128) output block -- no masked vst, no wrapper transpose. ---
    out2d = (jnp.dot(h_all_ref[...], w3_ref[...],
                     preferred_element_type=jnp.float32) + b3_ref[...])
    for t in range(L):                        # static slices / static lane offsets
        out_ref[:, t * OUT_PAD:(t + 1) * OUT_PAD] = out2d[t * bt:(t + 1) * bt, :]


def _pack_kernel_params(p):
    """Fold LSTM biases; pad only the nn3 projection to 128 output lanes."""
    out_dim = p["w3"].shape[1]
    bg_p = p["bih"] + p["bhh"]                                          # (1, 256)
    w3_p = jnp.zeros((HIDDEN, OUT_PAD), jnp.float32).at[:, :out_dim].set(p["w3"])
    b3_p = jnp.zeros((1, OUT_PAD), jnp.float32).at[:, :out_dim].set(p["b3"])
    return bg_p, w3_p, b3_p


@functools.partial(jax.jit, static_argnames=("block_b",))
def lstm_forward(x, params, block_b=None):
    B, input_dim = x.shape
    out_dim = params["w3"].shape[1]

    # Batch tile: always a multiple of 8 sublanes; default cap raised to 512
    # (per-tile VMEM ~10 MB, well inside even v7x's default 32 MiB scoped limit).
    # For v7x prefer block_b <= ceil(B/2) so the batch grid has >= 2 parallel steps.
    b8 = _round_up(B, 8)
    if block_b is None:
        block_b = min(512, b8)
    block_b = _round_up(min(block_b, b8), 8)
    B_pad = _round_up(B, block_b)
    xp = x if B_pad == B else jnp.concatenate(
        [x, jnp.zeros((B_pad - B, input_dim), x.dtype)], axis=0)
    grid = (B_pad // block_b,)

    bg_p, w3_p, b3_p = _pack_kernel_params(params)
    args = (xp, params["w1"], params["b1"], params["w2"], params["b2"],
            params["wih"], params["whh"], bg_p, w3_p, b3_p)

    def full(a):   # small weight/bias: whole array resident in VMEM for every tile
        # TODO(synk): pipeline_mode=pl.Buffered(1) would drop the dead second buffer
        #             of these grid-constant blocks (~0.2 MB); left default-buffered.
        return pl.BlockSpec(a.shape, lambda i: (0,) * a.ndim)

    flops = 2 * B_pad * (input_dim * HIDDEN + HIDDEN * HIDDEN
                         + L * HIDDEN * 4 * HIDDEN      # gates_x + (L-1) recurrence
                         + L * HIDDEN * OUT_PAD)        # fused nn3 epilogue
    bytes_accessed = 4 * (sum(int(a.size) for a in args) + B_pad * L * OUT_PAD)

    out_flat = pl.pallas_call(
        lstm_kernel,
        out_shape=jax.ShapeDtypeStruct((B_pad, L * OUT_PAD), jnp.float32),
        grid_spec=pltpu.PrefetchScalarGridSpec(
            num_scalar_prefetch=0,
            grid=grid,
            in_specs=[pl.BlockSpec((block_b, input_dim), lambda i: (i, 0))]
                     + [full(a) for a in args[1:]],
            out_specs=pl.BlockSpec((block_b, L * OUT_PAD), lambda i: (i, 0)),
            scratch_shapes=[pltpu.VMEM((L * block_b, HIDDEN), jnp.float32)],
        ),
        compiler_params=pltpu.CompilerParams(
            dimension_semantics=("parallel",)),
        cost_estimate=pl.CostEstimate(
            flops=int(flops),
            transcendentals=int(5 * L * B_pad * HIDDEN),
            bytes_accessed=int(bytes_accessed)),
    )(*args)

    # Already batch-major: split the time axis and drop the output-lane padding.
    return out_flat[:B].reshape(B, L, OUT_PAD)[:, :, :out_dim]


def init_params(key, input_dim, output_dim):
    """Deterministic PyTorch-style U(-1/sqrt(fan_in), 1/sqrt(fan_in)) init.

    Weights stored already transposed to (in, out); biases as (1, out)."""
    ks = jax.random.split(key, 10)

    def unif(k, shape, fan_in):
        bound = 1.0 / jnp.sqrt(jnp.float32(fan_in))
        return jax.random.uniform(k, shape, jnp.float32, -bound, bound)

    h = HIDDEN
    return {
        "w1": unif(ks[0], (input_dim, h), input_dim),
        "b1": unif(ks[1], (1, h), input_dim),
        "w2": unif(ks[2], (h, h), h),
        "b2": unif(ks[3], (1, h), h),
        # LSTM params, gate order [i, f, g, o]; (in, 4h) / (h, 4h)
        "wih": unif(ks[4], (h, 4 * h), h),
        "whh": unif(ks[5], (h, 4 * h), h),
        "bih": unif(ks[6], (1, 4 * h), h),
        "bhh": unif(ks[7], (1, 4 * h), h),
        "w3": unif(ks[8], (h, output_dim), h),
        "b3": unif(ks[9], (1, output_dim), h),
    }


def reference_forward(x, p):
    """Pure-JAX reference reproducing the PyTorch forward (unpadded params)."""
    h1 = _leaky_relu(x @ p["w1"] + p["b1"])
    h2 = _leaky_relu(h1 @ p["w2"] + p["b2"])
    gates_x = h2 @ p["wih"] + p["bih"] + p["bhh"]
    B = x.shape[0]
    h = jnp.zeros((B, HIDDEN), jnp.float32)
    c = jnp.zeros((B, HIDDEN), jnp.float32)
    outs = []
    for _ in range(L):
        gates = gates_x + h @ p["whh"]
        i_g = jax.nn.sigmoid(gates[:, 0 * HIDDEN:1 * HIDDEN])
        f_g = jax.nn.sigmoid(gates[:, 1 * HIDDEN:2 * HIDDEN])
        g_g = jnp.tanh(gates[:, 2 * HIDDEN:3 * HIDDEN])
        o_g = jax.nn.sigmoid(gates[:, 3 * HIDDEN:4 * HIDDEN])
        c = f_g * c + i_g * g_g
        h = o_g * jnp.tanh(c)
        outs.append(h @ p["w3"] + p["b3"])
    return jnp.stack(outs, axis=1)


if __name__ == "__main__":
    input_dim, output_dim, batch = 16, 8, 8
    key = jax.random.PRNGKey(0)
    k_x, k_p = jax.random.split(key)
    x = jax.random.normal(k_x, (batch, input_dim), jnp.float32)
    params = init_params(k_p, input_dim, output_dim)

    out = jax.block_until_ready(lstm_forward(x, params))

    ref = jax.block_until_ready(reference_forward(x, params))
    assert out.shape == (batch, L, output_dim)
    assert jnp.allclose(out, ref, rtol=2e-3, atol=2e-3), "mismatch vs JAX reference"

    print("KERNEL_OK")
</pallas_src>

<mosaic_0001>
module attributes {stable_mosaic.version = 11 : i64} {
  func.func @lstm_kernel(%arg0: i32, %arg1: memref<8x16xf32, #tpu.memory_space<vmem>>, %arg2: memref<16x64xf32, #tpu.memory_space<vmem>>, %arg3: memref<1x64xf32, #tpu.memory_space<vmem>>, %arg4: memref<64x64xf32, #tpu.memory_space<vmem>>, %arg5: memref<1x64xf32, #tpu.memory_space<vmem>>, %arg6: memref<64x256xf32, #tpu.memory_space<vmem>>, %arg7: memref<64x256xf32, #tpu.memory_space<vmem>>, %arg8: memref<1x256xf32, #tpu.memory_space<vmem>>, %arg9: memref<64x128xf32, #tpu.memory_space<vmem>>, %arg10: memref<1x128xf32, #tpu.memory_space<vmem>>, %arg11: memref<8x1280xf32, #tpu.memory_space<vmem>>, %arg12: memref<80x64xf32, #tpu.memory_space<vmem>>) attributes {dimension_semantics = [#tpu.dimension_semantics<parallel>], iteration_bounds = array<i64: 1>, scalar_prefetch = 0 : i64, scratch_operands = 1 : i64, tpu.core_type = #tpu.core_type<tc>, window_params = [{transform_indices = @transform_0, window_bounds = array<i64: 8, 16>}, {pipeline_mode = #tpu.pipeline_mode<synchronous>, transform_indices = @transform_1, window_bounds = array<i64: 16, 64>}, {pipeline_mode = #tpu.pipeline_mode<synchronous>, transform_indices = @transform_2, window_bounds = array<i64: 1, 64>}, {pipeline_mode = #tpu.pipeline_mode<synchronous>, transform_indices = @transform_3, window_bounds = array<i64: 64, 64>}, {pipeline_mode = #tpu.pipeline_mode<synchronous>, transform_indices = @transform_4, window_bounds = array<i64: 1, 64>}, {pipeline_mode = #tpu.pipeline_mode<synchronous>, transform_indices = @transform_5, window_bounds = array<i64: 64, 256>}, {pipeline_mode = #tpu.pipeline_mode<synchronous>, transform_indices = @transform_6, window_bounds = array<i64: 64, 256>}, {pipeline_mode = #tpu.pipeline_mode<synchronous>, transform_indices = @transform_7, window_bounds = array<i64: 1, 256>}, {pipeline_mode = #tpu.pipeline_mode<synchronous>, transform_indices = @transform_8, window_bounds = array<i64: 64, 128>}, {pipeline_mode = #tpu.pipeline_mode<synchronous>, transform_indices = @transform_9, window_bounds = array<i64: 1, 128>}, {transform_indices = @transform_10, window_bounds = array<i64: 8, 1280>}]} {
    %c0 = arith.constant 0 : index
    %c0_0 = arith.constant 0 : index
    %0 = vector.load %arg1[%c0, %c0_0] : memref<8x16xf32, #tpu.memory_space<vmem>>, vector<8x16xf32>
    %c0_1 = arith.constant 0 : index
    %c0_2 = arith.constant 0 : index
    %1 = vector.load %arg2[%c0_1, %c0_2] : memref<16x64xf32, #tpu.memory_space<vmem>>, vector<16x64xf32>
    %cst = arith.constant dense<0.000000e+00> : vector<8x64xf32>
    %2 = tpu.matmul %0, %1, %cst {dimension_numbers = #tpu.dot_dimension_numbers<[1], [0], [0], [1], [0, 0, 1, 1], [], []>} : vector<8x16xf32>, vector<16x64xf32>, vector<8x64xf32> -> vector<8x64xf32>
    %c0_3 = arith.constant 0 : index
    %c0_4 = arith.constant 0 : index
    %3 = vector.load %arg3[%c0_3, %c0_4] : memref<1x64xf32, #tpu.memory_space<vmem>>, vector<1x64xf32>
    %4 = vector.broadcast %3 : vector<1x64xf32> to vector<8x64xf32>
    %5 = arith.addf %2, %4 : vector<8x64xf32>
    %cst_5 = arith.constant 0.000000e+00 : f32
    %6 = vector.broadcast %cst_5 : f32 to vector<8x64xf32>
    %7 = arith.cmpf oge, %5, %6 : vector<8x64xf32>
    %cst_6 = arith.constant 0.00999999977 : f32
    %8 = vector.broadcast %cst_6 : f32 to vector<8x64xf32>
    %9 = arith.mulf %8, %5 : vector<8x64xf32>
    %10 = arith.select %7, %5, %9 : vector<8x64xi1>, vector<8x64xf32>
    %c0_7 = arith.constant 0 : index
    %c0_8 = arith.constant 0 : index
    %11 = vector.load %arg4[%c0_7, %c0_8] : memref<64x64xf32, #tpu.memory_space<vmem>>, vector<64x64xf32>
    %cst_9 = arith.constant dense<0.000000e+00> : vector<8x64xf32>
    %12 = tpu.matmul %10, %11, %cst_9 {dimension_numbers = #tpu.dot_dimension_numbers<[1], [0], [0], [1], [0, 0, 1, 1], [], []>} : vector<8x64xf32>, vector<64x64xf32>, vector<8x64xf32> -> vector<8x64xf32>
    %c0_10 = arith.constant 0 : index
    %c0_11 = arith.constant 0 : index
    %13 = vector.load %arg5[%c0_10, %c0_11] : memref<1x64xf32, #tpu.memory_space<vmem>>, vector<1x64xf32>
    %14 = vector.broadcast %13 : vector<1x64xf32> to vector<8x64xf32>
    %15 = arith.addf %12, %14 : vector<8x64xf32>
    %cst_12 = arith.constant 0.000000e+00 : f32
    %16 = vector.broadcast %cst_12 : f32 to vector<8x64xf32>
    %17 = arith.cmpf oge, %15, %16 : vector<8x64xf32>
    %cst_13 = arith.constant 0.00999999977 : f32
    %18 = vector.broadcast %cst_13 : f32 to vector<8x64xf32>
    %19 = arith.mulf %18, %15 : vector<8x64xf32>
    %20 = arith.select %17, %15, %19 : vector<8x64xi1>, vector<8x64xf32>
    %c0_14 = arith.constant 0 : index
    %c0_15 = arith.constant 0 : index
    %21 = vector.load %arg6[%c0_14, %c0_15] : memref<64x256xf32, #tpu.memory_space<vmem>>, vector<64x256xf32>
    %cst_16 = arith.constant dense<0.000000e+00> : vector<8x256xf32>
    %22 = tpu.matmul %20, %21, %cst_16 {dimension_numbers = #tpu.dot_dimension_numbers<[1], [0], [0], [1], [0, 0, 1, 1], [], []>} : vector<8x64xf32>, vector<64x256xf32>, vector<8x256xf32> -> vector<8x256xf32>
    %c0_17 = arith.constant 0 : index
    %c0_18 = arith.constant 0 : index
    %23 = vector.load %arg8[%c0_17, %c0_18] : memref<1x256xf32, #tpu.memory_space<vmem>>, vector<1x256xf32>
    %24 = vector.broadcast %23 : vector<1x256xf32> to vector<8x256xf32>
    %25 = arith.addf %22, %24 : vector<8x256xf32>
    %c0_19 = arith.constant 0 : index
    %c0_20 = arith.constant 0 : index
    %26 = vector.load %arg7[%c0_19, %c0_20] : memref<64x256xf32, #tpu.memory_space<vmem>>, vector<64x256xf32>
    %cst_21 = arith.constant 0.000000e+00 : f32
    %27 = vector.broadcast %cst_21 : f32 to vector<8x64xf32>
    %28 = vector.extract_strided_slice %25 {offsets = [0, 0], sizes = [8, 64], strides = [1, 1]} : vector<8x256xf32> to vector<8x64xf32>
    %29 = arith.negf %28 : vector<8x64xf32>
    %30 = math.exp %29 : vector<8x64xf32>
    %cst_22 = arith.constant 1.000000e+00 : f32
    %31 = vector.broadcast %cst_22 : f32 to vector<8x64xf32>
    %32 = arith.addf %31, %30 : vector<8x64xf32>
    %33 = arith.divf %31, %32 : vector<8x64xf32>
    %34 = vector.extract_strided_slice %25 {offsets = [0, 64], sizes = [8, 64], strides = [1, 1]} : vector<8x256xf32> to vector<8x64xf32>
    %35 = arith.negf %34 : vector<8x64xf32>
    %36 = math.exp %35 : vector<8x64xf32>
    %cst_23 = arith.constant 1.000000e+00 : f32
    %37 = vector.broadcast %cst_23 : f32 to vector<8x64xf32>
    %38 = arith.addf %37, %36 : vector<8x64xf32>
    %39 = arith.divf %37, %38 : vector<8x64xf32>
    %40 = vector.extract_strided_slice %25 {offsets = [0, 128], sizes = [8, 64], strides = [1, 1]} : vector<8x256xf32> to vector<8x64xf32>
    %41 = math.tanh %40 : vector<8x64xf32>
    %42 = vector.extract_strided_slice %25 {offsets = [0, 192], sizes = [8, 64], strides = [1, 1]} : vector<8x256xf32> to vector<8x64xf32>
    %43 = arith.negf %42 : vector<8x64xf32>
    %44 = math.exp %43 : vector<8x64xf32>
    %cst_24 = arith.constant 1.000000e+00 : f32
    %45 = vector.broadcast %cst_24 : f32 to vector<8x64xf32>
    %46 = arith.addf %45, %44 : vector<8x64xf32>
    %47 = arith.divf %45, %46 : vector<8x64xf32>
    %48 = arith.mulf %39, %27 : vector<8x64xf32>
    %49 = arith.mulf %33, %41 : vector<8x64xf32>
    %50 = arith.addf %48, %49 : vector<8x64xf32>
    %51 = math.tanh %50 : vector<8x64xf32>
    %52 = arith.mulf %47, %51 : vector<8x64xf32>
    %c0_25 = arith.constant 0 : index
    %c0_26 = arith.constant 0 : index
    %53 = vector.load %arg12[%c0_25, %c0_26] : memref<80x64xf32, #tpu.memory_space<vmem>>, vector<8x64xf32>
    tpu.vector_store %arg12[%c0_25, %c0_26], %52 {strides = array<i32>} : memref<80x64xf32, #tpu.memory_space<vmem>>, vector<8x64xf32>,
    %c1_i32 = arith.constant 1 : i32
    %cst_27 = arith.constant dense<0.000000e+00> : vector<8x256xf32>
    %54 = tpu.matmul %52, %26, %cst_27 {dimension_numbers = #tpu.dot_dimension_numbers<[1], [0], [0], [1], [0, 0, 1, 1], [], []>} : vector<8x64xf32>, vector<64x256xf32>, vector<8x256xf32> -> vector<8x256xf32>
    %55 = arith.addf %25, %54 : vector<8x256xf32>
    %56 = vector.extract_strided_slice %55 {offsets = [0, 0], sizes = [8, 64], strides = [1, 1]} : vector<8x256xf32> to vector<8x64xf32>
    %57 = arith.negf %56 : vector<8x64xf32>
    %58 = math.exp %57 : vector<8x64xf32>
    %cst_28 = arith.constant 1.000000e+00 : f32
    %59 = vector.broadcast %cst_28 : f32 to vector<8x64xf32>
    %60 = arith.addf %59, %58 : vector<8x64xf32>
    %61 = arith.divf %59, %60 : vector<8x64xf32>
    %62 = vector.extract_strided_slice %55 {offsets = [0, 64], sizes = [8, 64], strides = [1, 1]} : vector<8x256xf32> to vector<8x64xf32>
    %63 = arith.negf %62 : vector<8x64xf32>
    %64 = math.exp %63 : vector<8x64xf32>
    %cst_29 = arith.constant 1.000000e+00 : f32
    %65 = vector.broadcast %cst_29 : f32 to vector<8x64xf32>
    %66 = arith.addf %65, %64 : vector<8x64xf32>
    %67 = arith.divf %65, %66 : vector<8x64xf32>
    %68 = vector.extract_strided_slice %55 {offsets = [0, 128], sizes = [8, 64], strides = [1, 1]} : vector<8x256xf32> to vector<8x64xf32>
    %69 = math.tanh %68 : vector<8x64xf32>
    %70 = vector.extract_strided_slice %55 {offsets = [0, 192], sizes = [8, 64], strides = [1, 1]} : vector<8x256xf32> to vector<8x64xf32>
    %71 = arith.negf %70 : vector<8x64xf32>
    %72 = math.exp %71 : vector<8x64xf32>
    %cst_30 = arith.constant 1.000000e+00 : f32
    %73 = vector.broadcast %cst_30 : f32 to vector<8x64xf32>
    %74 = arith.addf %73, %72 : vector<8x64xf32>
    %75 = arith.divf %73, %74 : vector<8x64xf32>
    %76 = arith.mulf %67, %50 : vector<8x64xf32>
    %77 = arith.mulf %61, %69 : vector<8x64xf32>
    %78 = arith.addf %76, %77 : vector<8x64xf32>
    %79 = math.tanh %78 : vector<8x64xf32>
    %80 = arith.mulf %75, %79 : vector<8x64xf32>
    %c8_i32 = arith.constant 8 : i32
    %81 = arith.muli %c1_i32, %c8_i32 : i32
    %82 = tpu.assume_multiple %81, 8 : i32
    %83 = arith.index_cast %82 : i32 to index
    %c0_31 = arith.constant 0 : index
    %84 = vector.load %arg12[%83, %c0_31] : memref<80x64xf32, #tpu.memory_space<vmem>>, vector<8x64xf32>
    tpu.vector_store %arg12[%83, %c0_31], %80 {strides = array<i32>} : memref<80x64xf32, #tpu.memory_space<vmem>>, vector<8x64xf32>,
    %c2_i32 = arith.constant 2 : i32
    %cst_32 = arith.constant dense<0.000000e+00> : vector<8x256xf32>
    %85 = tpu.matmul %80, %26, %cst_32 {dimension_numbers = #tpu.dot_dimension_numbers<[1], [0], [0], [1], [0, 0, 1, 1], [], []>} : vector<8x64xf32>, vector<64x256xf32>, vector<8x256xf32> -> vector<8x256xf32>
    %86 = arith.addf %25, %85 : vector<8x256xf32>
    %87 = vector.extract_strided_slice %86 {offsets = [0, 0], sizes = [8, 64], strides = [1, 1]} : vector<8x256xf32> to vector<8x64xf32>
    %88 = arith.negf %87 : vector<8x64xf32>
    %89 = math.exp %88 : vector<8x64xf32>
    %cst_33 = arith.constant 1.000000e+00 : f32
    %90 = vector.broadcast %cst_33 : f32 to vector<8x64xf32>
    %91 = arith.addf %90, %89 : vector<8x64xf32>
    %92 = arith.divf %90, %91 : vector<8x64xf32>
    %93 = vector.extract_strided_slice %86 {offsets = [0, 64], sizes = [8, 64], strides = [1, 1]} : vector<8x256xf32> to vector<8x64xf32>
    %94 = arith.negf %93 : vector<8x64xf32>
    %95 = math.exp %94 : vector<8x64xf32>
    %cst_34 = arith.constant 1.000000e+00 : f32
    %96 = vector.broadcast %cst_34 : f32 to vector<8x64xf32>
    %97 = arith.addf %96, %95 : vector<8x64xf32>
    %98 = arith.divf %96, %97 : vector<8x64xf32>
    %99 = vector.extract_strided_slice %86 {offsets = [0, 128], sizes = [8, 64], strides = [1, 1]} : vector<8x256xf32> to vector<8x64xf32>
    %100 = math.tanh %99 : vector<8x64xf32>
    %101 = vector.extract_strided_slice %86 {offsets = [0, 192], sizes = [8, 64], strides = [1, 1]} : vector<8x256xf32> to vector<8x64xf32>
    %102 = arith.negf %101 : vector<8x64xf32>
    %103 = math.exp %102 : vector<8x64xf32>
    %cst_35 = arith.constant 1.000000e+00 : f32
    %104 = vector.broadcast %cst_35 : f32 to vector<8x64xf32>
    %105 = arith.addf %104, %103 : vector<8x64xf32>
    %106 = arith.divf %104, %105 : vector<8x64xf32>
    %107 = arith.mulf %98, %78 : vector<8x64xf32>
    %108 = arith.mulf %92, %100 : vector<8x64xf32>
    %109 = arith.addf %107, %108 : vector<8x64xf32>
    %110 = math.tanh %109 : vector<8x64xf32>
    %111 = arith.mulf %106, %110 : vector<8x64xf32>
    %c8_i32_36 = arith.constant 8 : i32
    %112 = arith.muli %c2_i32, %c8_i32_36 : i32
    %113 = tpu.assume_multiple %112, 8 : i32
    %114 = arith.index_cast %113 : i32 to index
    %c0_37 = arith.constant 0 : index
    %115 = vector.load %arg12[%114, %c0_37] : memref<80x64xf32, #tpu.memory_space<vmem>>, vector<8x64xf32>
    tpu.vector_store %arg12[%114, %c0_37], %111 {strides = array<i32>} : memref<80x64xf32, #tpu.memory_space<vmem>>, vector<8x64xf32>,
    %c3_i32 = arith.constant 3 : i32
    %cst_38 = arith.constant dense<0.000000e+00> : vector<8x256xf32>
    %116 = tpu.matmul %111, %26, %cst_38 {dimension_numbers = #tpu.dot_dimension_numbers<[1], [0], [0], [1], [0, 0, 1, 1], [], []>} : vector<8x64xf32>, vector<64x256xf32>, vector<8x256xf32> -> vector<8x256xf32>
    %117 = arith.addf %25, %116 : vector<8x256xf32>
    %118 = vector.extract_strided_slice %117 {offsets = [0, 0], sizes = [8, 64], strides = [1, 1]} : vector<8x256xf32> to vector<8x64xf32>
    %119 = arith.negf %118 : vector<8x64xf32>
    %120 = math.exp %119 : vector<8x64xf32>
    %cst_39 = arith.constant 1.000000e+00 : f32
    %121 = vector.broadcast %cst_39 : f32 to vector<8x64xf32>
    %122 = arith.addf %121, %120 : vector<8x64xf32>
    %123 = arith.divf %121, %122 : vector<8x64xf32>
    %124 = vector.extract_strided_slice %117 {offsets = [0, 64], sizes = [8, 64], strides = [1, 1]} : vector<8x256xf32> to vector<8x64xf32>
    %125 = arith.negf %124 : vector<8x64xf32>
    %126 = math.exp %125 : vector<8x64xf32>
    %cst_40 = arith.constant 1.000000e+00 : f32
    %127 = vector.broadcast %cst_40 : f32 to vector<8x64xf32>
    %128 = arith.addf %127, %126 : vector<8x64xf32>
    %129 = arith.divf %127, %128 : vector<8x64xf32>
    %130 = vector.extract_strided_slice %117 {offsets = [0, 128], sizes = [8, 64], strides = [1, 1]} : vector<8x256xf32> to vector<8x64xf32>
    %131 = math.tanh %130 : vector<8x64xf32>
    %132 = vector.extract_strided_slice %117 {offsets = [0, 192], sizes = [8, 64], strides = [1, 1]} : vector<8x256xf32> to vector<8x64xf32>
    %133 = arith.negf %132 : vector<8x64xf32>
    %134 = math.exp %133 : vector<8x64xf32>
    %cst_41 = arith.constant 1.000000e+00 : f32
    %135 = vector.broadcast %cst_41 : f32 to vector<8x64xf32>
    %136 = arith.addf %135, %134 : vector<8x64xf32>
    %137 = arith.divf %135, %136 : vector<8x64xf32>
    %138 = arith.mulf %129, %109 : vector<8x64xf32>
    %139 = arith.mulf %123, %131 : vector<8x64xf32>
    %140 = arith.addf %138, %139 : vector<8x64xf32>
    %141 = math.tanh %140 : vector<8x64xf32>
    %142 = arith.mulf %137, %141 : vector<8x64xf32>
    %c8_i32_42 = arith.constant 8 : i32
    %143 = arith.muli %c3_i32, %c8_i32_42 : i32
    %144 = tpu.assume_multiple %143, 8 : i32
    %145 = arith.index_cast %144 : i32 to index
    %c0_43 = arith.constant 0 : index
    %146 = vector.load %arg12[%145, %c0_43] : memref<80x64xf32, #tpu.memory_space<vmem>>, vector<8x64xf32>
    tpu.vector_store %arg12[%145, %c0_43], %142 {strides = array<i32>} : memref<80x64xf32, #tpu.memory_space<vmem>>, vector<8x64xf32>,
    %c4_i32 = arith.constant 4 : i32
    %cst_44 = arith.constant dense<0.000000e+00> : vector<8x256xf32>
    %147 = tpu.matmul %142, %26, %cst_44 {dimension_numbers = #tpu.dot_dimension_numbers<[1], [0], [0], [1], [0, 0, 1, 1], [], []>} : vector<8x64xf32>, vector<64x256xf32>, vector<8x256xf32> -> vector<8x256xf32>
    %148 = arith.addf %25, %147 : vector<8x256xf32>
    %149 = vector.extract_strided_slice %148 {offsets = [0, 0], sizes = [8, 64], strides = [1, 1]} : vector<8x256xf32> to vector<8x64xf32>
    %150 = arith.negf %149 : vector<8x64xf32>
    %151 = math.exp %150 : vector<8x64xf32>
    %cst_45 = arith.constant 1.000000e+00 : f32
    %152 = vector.broadcast %cst_45 : f32 to vector<8x64xf32>
    %153 = arith.addf %152, %151 : vector<8x64xf32>
    %154 = arith.divf %152, %153 : vector<8x64xf32>
    %155 = vector.extract_strided_slice %148 {offsets = [0, 64], sizes = [8, 64], strides = [1, 1]} : vector<8x256xf32> to vector<8x64xf32>
    %156 = arith.negf %155 : vector<8x64xf32>
    %157 = math.exp %156 : vector<8x64xf32>
    %cst_46 = arith.constant 1.000000e+00 : f32
    %158 = vector.broadcast %cst_46 : f32 to vector<8x64xf32>
    %159 = arith.addf %158, %157 : vector<8x64xf32>
    %160 = arith.divf %158, %159 : vector<8x64xf32>
    %161 = vector.extract_strided_slice %148 {offsets = [0, 128], sizes = [8, 64], strides = [1, 1]} : vector<8x256xf32> to vector<8x64xf32>
    %162 = math.tanh %161 : vector<8x64xf32>
    %163 = vector.extract_strided_slice %148 {offsets = [0, 192], sizes = [8, 64], strides = [1, 1]} : vector<8x256xf32> to vector<8x64xf32>
    %164 = arith.negf %163 : vector<8x64xf32>
    %165 = math.exp %164 : vector<8x64xf32>
    %cst_47 = arith.constant 1.000000e+00 : f32
    %166 = vector.broadcast %cst_47 : f32 to vector<8x64xf32>
    %167 = arith.addf %166, %165 : vector<8x64xf32>
    %168 = arith.divf %166, %167 : vector<8x64xf32>
    %169 = arith.mulf %160, %140 : vector<8x64xf32>
    %170 = arith.mulf %154, %162 : vector<8x64xf32>
    %171 = arith.addf %169, %170 : vector<8x64xf32>
    %172 = math.tanh %171 : vector<8x64xf32>
    %173 = arith.mulf %168, %172 : vector<8x64xf32>
    %c8_i32_48 = arith.constant 8 : i32
    %174 = arith.muli %c4_i32, %c8_i32_48 : i32
    %175 = tpu.assume_multiple %174, 8 : i32
    %176 = arith.index_cast %175 : i32 to index
    %c0_49 = arith.constant 0 : index
    %177 = vector.load %arg12[%176, %c0_49] : memref<80x64xf32, #tpu.memory_space<vmem>>, vector<8x64xf32>
    tpu.vector_store %arg12[%176, %c0_49], %173 {strides = array<i32>} : memref<80x64xf32, #tpu.memory_space<vmem>>, vector<8x64xf32>,
    %c5_i32 = arith.constant 5 : i32
    %cst_50 = arith.constant dense<0.000000e+00> : vector<8x256xf32>
    %178 = tpu.matmul %173, %26, %cst_50 {dimension_numbers = #tpu.dot_dimension_numbers<[1], [0], [0], [1], [0, 0, 1, 1], [], []>} : vector<8x64xf32>, vector<64x256xf32>, vector<8x256xf32> -> vector<8x256xf32>
    %179 = arith.addf %25, %178 : vector<8x256xf32>
    %180 = vector.extract_strided_slice %179 {offsets = [0, 0], sizes = [8, 64], strides = [1, 1]} : vector<8x256xf32> to vector<8x64xf32>
    %181 = arith.negf %180 : vector<8x64xf32>
    %182 = math.exp %181 : vector<8x64xf32>
    %cst_51 = arith.constant 1.000000e+00 : f32
    %183 = vector.broadcast %cst_51 : f32 to vector<8x64xf32>
    %184 = arith.addf %183, %182 : vector<8x64xf32>
    %185 = arith.divf %183, %184 : vector<8x64xf32>
    %186 = vector.extract_strided_slice %179 {offsets = [0, 64], sizes = [8, 64], strides = [1, 1]} : vector<8x256xf32> to vector<8x64xf32>
    %187 = arith.negf %186 : vector<8x64xf32>
    %188 = math.exp %187 : vector<8x64xf32>
    %cst_52 = arith.constant 1.000000e+00 : f32
    %189 = vector.broadcast %cst_52 : f32 to vector<8x64xf32>
    %190 = arith.addf %189, %188 : vector<8x64xf32>
    %191 = arith.divf %189, %190 : vector<8x64xf32>
    %192 = vector.extract_strided_slice %179 {offsets = [0, 128], sizes = [8, 64], strides = [1, 1]} : vector<8x256xf32> to vector<8x64xf32>
    %193 = math.tanh %192 : vector<8x64xf32>
    %194 = vector.extract_strided_slice %179 {offsets = [0, 192], sizes = [8, 64], strides = [1, 1]} : vector<8x256xf32> to vector<8x64xf32>
    %195 = arith.negf %194 : vector<8x64xf32>
    %196 = math.exp %195 : vector<8x64xf32>
    %cst_53 = arith.constant 1.000000e+00 : f32
    %197 = vector.broadcast %cst_53 : f32 to vector<8x64xf32>
    %198 = arith.addf %197, %196 : vector<8x64xf32>
    %199 = arith.divf %197, %198 : vector<8x64xf32>
    %200 = arith.mulf %191, %171 : vector<8x64xf32>
    %201 = arith.mulf %185, %193 : vector<8x64xf32>
    %202 = arith.addf %200, %201 : vector<8x64xf32>
    %203 = math.tanh %202 : vector<8x64xf32>
    %204 = arith.mulf %199, %203 : vector<8x64xf32>
    %c8_i32_54 = arith.constant 8 : i32
    %205 = arith.muli %c5_i32, %c8_i32_54 : i32
    %206 = tpu.assume_multiple %205, 8 : i32
    %207 = arith.index_cast %206 : i32 to index
    %c0_55 = arith.constant 0 : index
    %208 = vector.load %arg12[%207, %c0_55] : memref<80x64xf32, #tpu.memory_space<vmem>>, vector<8x64xf32>
    tpu.vector_store %arg12[%207, %c0_55], %204 {strides = array<i32>} : memref<80x64xf32, #tpu.memory_space<vmem>>, vector<8x64xf32>,
    %c6_i32 = arith.constant 6 : i32
    %cst_56 = arith.constant dense<0.000000e+00> : vector<8x256xf32>
    %209 = tpu.matmul %204, %26, %cst_56 {dimension_numbers = #tpu.dot_dimension_numbers<[1], [0], [0], [1], [0, 0, 1, 1], [], []>} : vector<8x64xf32>, vector<64x256xf32>, vector<8x256xf32> -> vector<8x256xf32>
    %210 = arith.addf %25, %209 : vector<8x256xf32>
    %211 = vector.extract_strided_slice %210 {offsets = [0, 0], sizes = [8, 64], strides = [1, 1]} : vector<8x256xf32> to vector<8x64xf32>
    %212 = arith.negf %211 : vector<8x64xf32>
    %213 = math.exp %212 : vector<8x64xf32>
    %cst_57 = arith.constant 1.000000e+00 : f32
    %214 = vector.broadcast %cst_57 : f32 to vector<8x64xf32>
    %215 = arith.addf %214, %213 : vector<8x64xf32>
    %216 = arith.divf %214, %215 : vector<8x64xf32>
    %217 = vector.extract_strided_slice %210 {offsets = [0, 64], sizes = [8, 64], strides = [1, 1]} : vector<8x256xf32> to vector<8x64xf32>
    %218 = arith.negf %217 : vector<8x64xf32>
    %219 = math.exp %218 : vector<8x64xf32>
    %cst_58 = arith.constant 1.000000e+00 : f32
    %220 = vector.broadcast %cst_58 : f32 to vector<8x64xf32>
    %221 = arith.addf %220, %219 : vector<8x64xf32>
    %222 = arith.divf %220, %221 : vector<8x64xf32>
    %223 = vector.extract_strided_slice %210 {offsets = [0, 128], sizes = [8, 64], strides = [1, 1]} : vector<8x256xf32> to vector<8x64xf32>
    %224 = math.tanh %223 : vector<8x64xf32>
    %225 = vector.extract_strided_slice %210 {offsets = [0, 192], sizes = [8, 64], strides = [1, 1]} : vector<8x256xf32> to vector<8x64xf32>
    %226 = arith.negf %225 : vector<8x64xf32>
    %227 = math.exp %226 : vector<8x64xf32>
    %cst_59 = arith.constant 1.000000e+00 : f32
    %228 = vector.broadcast %cst_59 : f32 to vector<8x64xf32>
    %229 = arith.addf %228, %227 : vector<8x64xf32>
    %230 = arith.divf %228, %229 : vector<8x64xf32>
    %231 = arith.mulf %222, %202 : vector<8x64xf32>
    %232 = arith.mulf %216, %224 : vector<8x64xf32>
    %233 = arith.addf %231, %232 : vector<8x64xf32>
    %234 = math.tanh %233 : vector<8x64xf32>
    %235 = arith.mulf %230, %234 : vector<8x64xf32>
    %c8_i32_60 = arith.constant 8 : i32
    %236 = arith.muli %c6_i32, %c8_i32_60 : i32
    %237 = tpu.assume_multiple %236, 8 : i32
    %238 = arith.index_cast %237 : i32 to index
    %c0_61 = arith.constant 0 : index
    %239 = vector.load %arg12[%238, %c0_61] : memref<80x64xf32, #tpu.memory_space<vmem>>, vector<8x64xf32>
    tpu.vector_store %arg12[%238, %c0_61], %235 {strides = array<i32>} : memref<80x64xf32, #tpu.memory_space<vmem>>, vector<8x64xf32>,
    %c7_i32 = arith.constant 7 : i32
    %cst_62 = arith.constant dense<0.000000e+00> : vector<8x256xf32>
    %240 = tpu.matmul %235, %26, %cst_62 {dimension_numbers = #tpu.dot_dimension_numbers<[1], [0], [0], [1], [0, 0, 1, 1], [], []>} : vector<8x64xf32>, vector<64x256xf32>, vector<8x256xf32> -> vector<8x256xf32>
    %241 = arith.addf %25, %240 : vector<8x256xf32>
    %242 = vector.extract_strided_slice %241 {offsets = [0, 0], sizes = [8, 64], strides = [1, 1]} : vector<8x256xf32> to vector<8x64xf32>
    %243 = arith.negf %242 : vector<8x64xf32>
    %244 = math.exp %243 : vector<8x64xf32>
    %cst_63 = arith.constant 1.000000e+00 : f32
    %245 = vector.broadcast %cst_63 : f32 to vector<8x64xf32>
    %246 = arith.addf %245, %244 : vector<8x64xf32>
    %247 = arith.divf %245, %246 : vector<8x64xf32>
    %248 = vector.extract_strided_slice %241 {offsets = [0, 64], sizes = [8, 64], strides = [1, 1]} : vector<8x256xf32> to vector<8x64xf32>
    %249 = arith.negf %248 : vector<8x64xf32>
    %250 = math.exp %249 : vector<8x64xf32>
    %cst_64 = arith.constant 1.000000e+00 : f32
    %251 = vector.broadcast %cst_64 : f32 to vector<8x64xf32>
    %252 = arith.addf %251, %250 : vector<8x64xf32>
    %253 = arith.divf %251, %252 : vector<8x64xf32>
    %254 = vector.extract_strided_slice %241 {offsets = [0, 128], sizes = [8, 64], strides = [1, 1]} : vector<8x256xf32> to vector<8x64xf32>
    %255 = math.tanh %254 : vector<8x64xf32>
    %256 = vector.extract_strided_slice %241 {offsets = [0, 192], sizes = [8, 64], strides = [1, 1]} : vector<8x256xf32> to vector<8x64xf32>
    %257 = arith.negf %256 : vector<8x64xf32>
    %258 = math.exp %257 : vector<8x64xf32>
    %cst_65 = arith.constant 1.000000e+00 : f32
    %259 = vector.broadcast %cst_65 : f32 to vector<8x64xf32>
    %260 = arith.addf %259, %258 : vector<8x64xf32>
    %261 = arith.divf %259, %260 : vector<8x64xf32>
    %262 = arith.mulf %253, %233 : vector<8x64xf32>
    %263 = arith.mulf %247, %255 : vector<8x64xf32>
    %264 = arith.addf %262, %263 : vector<8x64xf32>
    %265 = math.tanh %264 : vector<8x64xf32>
    %266 = arith.mulf %261, %265 : vector<8x64xf32>
    %c8_i32_66 = arith.constant 8 : i32
    %267 = arith.muli %c7_i32, %c8_i32_66 : i32
    %268 = tpu.assume_multiple %267, 8 : i32
    %269 = arith.index_cast %268 : i32 to index
    %c0_67 = arith.constant 0 : index
    %270 = vector.load %arg12[%269, %c0_67] : memref<80x64xf32, #tpu.memory_space<vmem>>, vector<8x64xf32>
    tpu.vector_store %arg12[%269, %c0_67], %266 {strides = array<i32>} : memref<80x64xf32, #tpu.memory_space<vmem>>, vector<8x64xf32>,
    %c8_i32_68 = arith.constant 8 : i32
    %cst_69 = arith.constant dense<0.000000e+00> : vector<8x256xf32>
    %271 = tpu.matmul %266, %26, %cst_69 {dimension_numbers = #tpu.dot_dimension_numbers<[1], [0], [0], [1], [0, 0, 1, 1], [], []>} : vector<8x64xf32>, vector<64x256xf32>, vector<8x256xf32> -> vector<8x256xf32>
    %272 = arith.addf %25, %271 : vector<8x256xf32>
    %273 = vector.extract_strided_slice %272 {offsets = [0, 0], sizes = [8, 64], strides = [1, 1]} : vector<8x256xf32> to vector<8x64xf32>
    %274 = arith.negf %273 : vector<8x64xf32>
    %275 = math.exp %274 : vector<8x64xf32>
    %cst_70 = arith.constant 1.000000e+00 : f32
    %276 = vector.broadcast %cst_70 : f32 to vector<8x64xf32>
    %277 = arith.addf %276, %275 : vector<8x64xf32>
    %278 = arith.divf %276, %277 : vector<8x64xf32>
    %279 = vector.extract_strided_slice %272 {offsets = [0, 64], sizes = [8, 64], strides = [1, 1]} : vector<8x256xf32> to vector<8x64xf32>
    %280 = arith.negf %279 : vector<8x64xf32>
    %281 = math.exp %280 : vector<8x64xf32>
    %cst_71 = arith.constant 1.000000e+00 : f32
    %282 = vector.broadcast %cst_71 : f32 to vector<8x64xf32>
    %283 = arith.addf %282, %281 : vector<8x64xf32>
    %284 = arith.divf %282, %283 : vector<8x64xf32>
    %285 = vector.extract_strided_slice %272 {offsets = [0, 128], sizes = [8, 64], strides = [1, 1]} : vector<8x256xf32> to vector<8x64xf32>
    %286 = math.tanh %285 : vector<8x64xf32>
    %287 = vector.extract_strided_slice %272 {offsets = [0, 192], sizes = [8, 64], strides = [1, 1]} : vector<8x256xf32> to vector<8x64xf32>
    %288 = arith.negf %287 : vector<8x64xf32>
    %289 = math.exp %288 : vector<8x64xf32>
    %cst_72 = arith.constant 1.000000e+00 : f32
    %290 = vector.broadcast %cst_72 : f32 to vector<8x64xf32>
    %291 = arith.addf %290, %289 : vector<8x64xf32>
    %292 = arith.divf %290, %291 : vector<8x64xf32>
    %293 = arith.mulf %284, %264 : vector<8x64xf32>
    %294 = arith.mulf %278, %286 : vector<8x64xf32>
    %295 = arith.addf %293, %294 : vector<8x64xf32>
    %296 = math.tanh %295 : vector<8x64xf32>
    %297 = arith.mulf %292, %296 : vector<8x64xf32>
    %c8_i32_73 = arith.constant 8 : i32
    %298 = arith.muli %c8_i32_68, %c8_i32_73 : i32
    %299 = tpu.assume_multiple %298, 8 : i32
    %300 = arith.index_cast %299 : i32 to index
    %c0_74 = arith.constant 0 : index
    %301 = vector.load %arg12[%300, %c0_74] : memref<80x64xf32, #tpu.memory_space<vmem>>, vector<8x64xf32>
    tpu.vector_store %arg12[%300, %c0_74], %297 {strides = array<i32>} : memref<80x64xf32, #tpu.memory_space<vmem>>, vector<8x64xf32>,
    %c9_i32 = arith.constant 9 : i32
    %cst_75 = arith.constant dense<0.000000e+00> : vector<8x256xf32>
    %302 = tpu.matmul %297, %26, %cst_75 {dimension_numbers = #tpu.dot_dimension_numbers<[1], [0], [0], [1], [0, 0, 1, 1], [], []>} : vector<8x64xf32>, vector<64x256xf32>, vector<8x256xf32> -> vector<8x256xf32>
    %303 = arith.addf %25, %302 : vector<8x256xf32>
    %304 = vector.extract_strided_slice %303 {offsets = [0, 0], sizes = [8, 64], strides = [1, 1]} : vector<8x256xf32> to vector<8x64xf32>
    %305 = arith.negf %304 : vector<8x64xf32>
    %306 = math.exp %305 : vector<8x64xf32>
    %cst_76 = arith.constant 1.000000e+00 : f32
    %307 = vector.broadcast %cst_76 : f32 to vector<8x64xf32>
    %308 = arith.addf %307, %306 : vector<8x64xf32>
    %309 = arith.divf %307, %308 : vector<8x64xf32>
    %310 = vector.extract_strided_slice %303 {offsets = [0, 64], sizes = [8, 64], strides = [1, 1]} : vector<8x256xf32> to vector<8x64xf32>
    %311 = arith.negf %310 : vector<8x64xf32>
    %312 = math.exp %311 : vector<8x64xf32>
    %cst_77 = arith.constant 1.000000e+00 : f32
    %313 = vector.broadcast %cst_77 : f32 to vector<8x64xf32>
    %314 = arith.addf %313, %312 : vector<8x64xf32>
    %315 = arith.divf %313, %314 : vector<8x64xf32>
    %316 = vector.extract_strided_slice %303 {offsets = [0, 128], sizes = [8, 64], strides = [1, 1]} : vector<8x256xf32> to vector<8x64xf32>
    %317 = math.tanh %316 : vector<8x64xf32>
    %318 = vector.extract_strided_slice %303 {offsets = [0, 192], sizes = [8, 64], strides = [1, 1]} : vector<8x256xf32> to vector<8x64xf32>
    %319 = arith.negf %318 : vector<8x64xf32>
    %320 = math.exp %319 : vector<8x64xf32>
    %cst_78 = arith.constant 1.000000e+00 : f32
    %321 = vector.broadcast %cst_78 : f32 to vector<8x64xf32>
    %322 = arith.addf %321, %320 : vector<8x64xf32>
    %323 = arith.divf %321, %322 : vector<8x64xf32>
    %324 = arith.mulf %315, %295 : vector<8x64xf32>
    %325 = arith.mulf %309, %317 : vector<8x64xf32>
    %326 = arith.addf %324, %325 : vector<8x64xf32>
    %327 = math.tanh %326 : vector<8x64xf32>
    %328 = arith.mulf %323, %327 : vector<8x64xf32>
    %c8_i32_79 = arith.constant 8 : i32
    %329 = arith.muli %c9_i32, %c8_i32_79 : i32
    %330 = tpu.assume_multiple %329, 8 : i32
    %331 = arith.index_cast %330 : i32 to index
    %c0_80 = arith.constant 0 : index
    %332 = vector.load %arg12[%331, %c0_80] : memref<80x64xf32, #tpu.memory_space<vmem>>, vector<8x64xf32>
    tpu.vector_store %arg12[%331, %c0_80], %328 {strides = array<i32>} : memref<80x64xf32, #tpu.memory_space<vmem>>, vector<8x64xf32>,
    %c9_i32_81 = arith.constant 9 : i32
    %c0_82 = arith.constant 0 : index
    %c0_83 = arith.constant 0 : index
    %333 = vector.load %arg12[%c0_82, %c0_83] : memref<80x64xf32, #tpu.memory_space<vmem>>, vector<80x64xf32>
    %c0_84 = arith.constant 0 : index
    %c0_85 = arith.constant 0 : index
    %334 = vector.load %arg9[%c0_84, %c0_85] : memref<64x128xf32, #tpu.memory_space<vmem>>, vector<64x128xf32>
    %cst_86 = arith.constant dense<0.000000e+00> : vector<80x128xf32>
    %335 = tpu.matmul %333, %334, %cst_86 {dimension_numbers = #tpu.dot_dimension_numbers<[1], [0], [0], [1], [0, 0, 1, 1], [], []>} : vector<80x64xf32>, vector<64x128xf32>, vector<80x128xf32> -> vector<80x128xf32>
    %c0_87 = arith.constant 0 : index
    %c0_88 = arith.constant 0 : index
    %336 = vector.load %arg10[%c0_87, %c0_88] : memref<1x128xf32, #tpu.memory_space<vmem>>, vector<1x128xf32>
    %337 = vector.broadcast %336 : vector<1x128xf32> to vector<80x128xf32>
    %338 = arith.addf %335, %337 : vector<80x128xf32>
    %339 = vector.extract_strided_slice %338 {offsets = [0, 0], sizes = [8, 128], strides = [1, 1]} : vector<80x128xf32> to vector<8x128xf32>
    %c0_89 = arith.constant 0 : index
    %c0_90 = arith.constant 0 : index
    %340 = vector.load %arg11[%c0_89, %c0_90] : memref<8x1280xf32, #tpu.memory_space<vmem>>, vector<8x128xf32>
    tpu.vector_store %arg11[%c0_89, %c0_90], %339 {strides = array<i32>} : memref<8x1280xf32, #tpu.memory_space<vmem>>, vector<8x128xf32>,
    %341 = vector.extract_strided_slice %338 {offsets = [8, 0], sizes = [8, 128], strides = [1, 1]} : vector<80x128xf32> to vector<8x128xf32>
    %c0_91 = arith.constant 0 : index
    %c128 = arith.constant 128 : index
    %342 = vector.load %arg11[%c0_91, %c128] : memref<8x1280xf32, #tpu.memory_space<vmem>>, vector<8x128xf32>
    tpu.vector_store %arg11[%c0_91, %c128], %341 {strides = array<i32>} : memref<8x1280xf32, #tpu.memory_space<vmem>>, vector<8x128xf32>,
    %343 = vector.extract_strided_slice %338 {offsets = [16, 0], sizes = [8, 128], strides = [1, 1]} : vector<80x128xf32> to vector<8x128xf32>
    %c0_92 = arith.constant 0 : index
    %c256 = arith.constant 256 : index
    %344 = vector.load %arg11[%c0_92, %c256] : memref<8x1280xf32, #tpu.memory_space<vmem>>, vector<8x128xf32>
    tpu.vector_store %arg11[%c0_92, %c256], %343 {strides = array<i32>} : memref<8x1280xf32, #tpu.memory_space<vmem>>, vector<8x128xf32>,
    %345 = vector.extract_strided_slice %338 {offsets = [24, 0], sizes = [8, 128], strides = [1, 1]} : vector<80x128xf32> to vector<8x128xf32>
    %c0_93 = arith.constant 0 : index
    %c384 = arith.constant 384 : index
    %346 = vector.load %arg11[%c0_93, %c384] : memref<8x1280xf32, #tpu.memory_space<vmem>>, vector<8x128xf32>
    tpu.vector_store %arg11[%c0_93, %c384], %345 {strides = array<i32>} : memref<8x1280xf32, #tpu.memory_space<vmem>>, vector<8x128xf32>,
    %347 = vector.extract_strided_slice %338 {offsets = [32, 0], sizes = [8, 128], strides = [1, 1]} : vector<80x128xf32> to vector<8x128xf32>
    %c0_94 = arith.constant 0 : index
    %c512 = arith.constant 512 : index
    %348 = vector.load %arg11[%c0_94, %c512] : memref<8x1280xf32, #tpu.memory_space<vmem>>, vector<8x128xf32>
    tpu.vector_store %arg11[%c0_94, %c512], %347 {strides = array<i32>} : memref<8x1280xf32, #tpu.memory_space<vmem>>, vector<8x128xf32>,
    %349 = vector.extract_strided_slice %338 {offsets = [40, 0], sizes = [8, 128], strides = [1, 1]} : vector<80x128xf32> to vector<8x128xf32>
    %c0_95 = arith.constant 0 : index
    %c640 = arith.constant 640 : index
    %350 = vector.load %arg11[%c0_95, %c640] : memref<8x1280xf32, #tpu.memory_space<vmem>>, vector<8x128xf32>
    tpu.vector_store %arg11[%c0_95, %c640], %349 {strides = array<i32>} : memref<8x1280xf32, #tpu.memory_space<vmem>>, vector<8x128xf32>,
    %351 = vector.extract_strided_slice %338 {offsets = [48, 0], sizes = [8, 128], strides = [1, 1]} : vector<80x128xf32> to vector<8x128xf32>
    %c0_96 = arith.constant 0 : index
    %c768 = arith.constant 768 : index
    %352 = vector.load %arg11[%c0_96, %c768] : memref<8x1280xf32, #tpu.memory_space<vmem>>, vector<8x128xf32>
    tpu.vector_store %arg11[%c0_96, %c768], %351 {strides = array<i32>} : memref<8x1280xf32, #tpu.memory_space<vmem>>, vector<8x128xf32>,
    %353 = vector.extract_strided_slice %338 {offsets = [56, 0], sizes = [8, 128], strides = [1, 1]} : vector<80x128xf32> to vector<8x128xf32>
    %c0_97 = arith.constant 0 : index
    %c896 = arith.constant 896 : index
    %354 = vector.load %arg11[%c0_97, %c896] : memref<8x1280xf32, #tpu.memory_space<vmem>>, vector<8x128xf32>
    tpu.vector_store %arg11[%c0_97, %c896], %353 {strides = array<i32>} : memref<8x1280xf32, #tpu.memory_space<vmem>>, vector<8x128xf32>,
    %355 = vector.extract_strided_slice %338 {offsets = [64, 0], sizes = [8, 128], strides = [1, 1]} : vector<80x128xf32> to vector<8x128xf32>
    %c0_98 = arith.constant 0 : index
    %c1024 = arith.constant 1024 : index
    %356 = vector.load %arg11[%c0_98, %c1024] : memref<8x1280xf32, #tpu.memory_space<vmem>>, vector<8x128xf32>
    tpu.vector_store %arg11[%c0_98, %c1024], %355 {strides = array<i32>} : memref<8x1280xf32, #tpu.memory_space<vmem>>, vector<8x128xf32>,
    %357 = vector.extract_strided_slice %338 {offsets = [72, 0], sizes = [8, 128], strides = [1, 1]} : vector<80x128xf32> to vector<8x128xf32>
    %c0_99 = arith.constant 0 : index
    %c1152 = arith.constant 1152 : index
    %358 = vector.load %arg11[%c0_99, %c1152] : memref<8x1280xf32, #tpu.memory_space<vmem>>, vector<8x128xf32>
    tpu.vector_store %arg11[%c0_99, %c1152], %357 {strides = array<i32>} : memref<8x1280xf32, #tpu.memory_space<vmem>>, vector<8x128xf32>,
    return
  }
  func.func @transform_0(%arg0: i32) -> (i32, i32) {
    %c0_i32 = arith.constant 0 : i32
    %c0_i32_0 = arith.constant 0 : i32
    return %arg0, %c0_i32 : i32, i32
  }
  func.func @transform_1(%arg0: i32) -> (i32, i32) {
    %c0_i32 = arith.constant 0 : i32
    %c0_i32_0 = arith.constant 0 : i32
    %c0_i32_1 = arith.constant 0 : i32
    return %c0_i32, %c0_i32_0 : i32, i32
  }
  func.func @transform_2(%arg0: i32) -> (i32, i32) {
    %c0_i32 = arith.constant 0 : i32
    %c0_i32_0 = arith.constant 0 : i32
    %c0_i32_1 = arith.constant 0 : i32
    return %c0_i32, %c0_i32_0 : i32, i32
  }
  func.func @transform_3(%arg0: i32) -> (i32, i32) {
    %c0_i32 = arith.constant 0 : i32
    %c0_i32_0 = arith.constant 0 : i32
    %c0_i32_1 = arith.constant 0 : i32
    return %c0_i32, %c0_i32_0 : i32, i32
  }
  func.func @transform_4(%arg0: i32) -> (i32, i32) {
    %c0_i32 = arith.constant 0 : i32
    %c0_i32_0 = arith.constant 0 : i32
    %c0_i32_1 = arith.constant 0 : i32
    return %c0_i32, %c0_i32_0 : i32, i32
  }
  func.func @transform_5(%arg0: i32) -> (i32, i32) {
    %c0_i32 = arith.constant 0 : i32
    %c0_i32_0 = arith.constant 0 : i32
    %c0_i32_1 = arith.constant 0 : i32
    return %c0_i32, %c0_i32_0 : i32, i32
  }
  func.func @transform_6(%arg0: i32) -> (i32, i32) {
    %c0_i32 = arith.constant 0 : i32
    %c0_i32_0 = arith.constant 0 : i32
    %c0_i32_1 = arith.constant 0 : i32
    return %c0_i32, %c0_i32_0 : i32, i32
  }
  func.func @transform_7(%arg0: i32) -> (i32, i32) {
    %c0_i32 = arith.constant 0 : i32
    %c0_i32_0 = arith.constant 0 : i32
    %c0_i32_1 = arith.constant 0 : i32
    return %c0_i32, %c0_i32_0 : i32, i32
  }
  func.func @transform_8(%arg0: i32) -> (i32, i32) {
    %c0_i32 = arith.constant 0 : i32
    %c0_i32_0 = arith.constant 0 : i32
    %c0_i32_1 = arith.constant 0 : i32
    return %c0_i32, %c0_i32_0 : i32, i32
  }
  func.func @transform_9(%arg0: i32) -> (i32, i32) {
    %c0_i32 = arith.constant 0 : i32
    %c0_i32_0 = arith.constant 0 : i32
    %c0_i32_1 = arith.constant 0 : i32
    return %c0_i32, %c0_i32_0 : i32, i32
  }
  func.func @transform_10(%arg0: i32) -> (i32, i32) {
    %c0_i32 = arith.constant 0 : i32
    %c0_i32_0 = arith.constant 0 : i32
    return %arg0, %c0_i32 : i32, i32
  }
}

</mosaic_0001>

<bundles_post_ra>
// kernel: lstm_forward.1
= control target key start
LH: loop header
LB: loop body
LE: loop exit
PB: predicated region body
PF: predicated region fallthrough
CT: control target
= control target key end

     0   :  { %15 = vsyncpa [#allocation4], 0  ;;  %s2342_s0 = inlined_call_operand.hbm [shape: f32[8,16], index: 0, kind: input, shape index: {}]   ;;  %s2343_s1 = inlined_call_operand.vmem [shape: f32[16,64], index: 1, kind: input, shape index: {}]   ;;  %s2344_s2 = inlined_call_operand.vmem [shape: f32[1,64], index: 2, kind: input, shape index: {}]   ;;  %s2345_s3 = inlined_call_operand.vmem [shape: f32[64,64], index: 3, kind: input, shape index: {}]   ;;  %s2346_s4 = inlined_call_operand.hbm [shape: f32[1,64], index: 4, kind: input, shape index: {}]   ;;  %s2347_s5 = inlined_call_operand.vmem [shape: f32[64,256], index: 5, kind: input, shape index: {}]   ;;  %s2348_s6 = inlined_call_operand.vmem [shape: f32[64,256], index: 6, kind: input, shape index: {}]   ;;  %s2349_s7 = inlined_call_operand.vmem [shape: f32[1,256], index: 7, kind: input, shape index: {}]   ;;  %s2350_s8 = inlined_call_operand.vmem [shape: f32[64,128], index: 8, kind: input, shape index: {}]   ;;  %s2351_s9 = inlined_call_operand.vmem [shape: f32[1,128], index: 9, kind: input, shape index: {}]   ;;  %s2352_s10 = inlined_call_operand.vmem [shape: f32[8,1280], index: 10, kind: output, shape index: {}]  }
   0x1   :  { %16 = vsyncpa [#allocation6], 0  ;;  %s1797_s13 = smov [#allocation3]   ;;  %s1798_s15 = smov [#allocation5]  }
   0x2   :  { %s23_s14 = sshll.u32 %s1797_s13, 4  ;;  %s39_s16 = sshll.u32 %s1798_s15, 4  ;;  %s24_s14 = int_to_ptr.vmem [resolvable:$true] %s23_s14  ;;  %s40_s16 = int_to_ptr.vmem [resolvable:$true] %s39_s16 }
   0x3   :  { %s1761_s17 = scalar_lea.vmem %s24_s14, 128  ;;  %p1766_p1 = scmp.lt.s32.totalorder %s24_s14, %s24_s14 }
   0x4   :  { %p1762_p0 = scmp.ne.s32.totalorder %s24_s14, %s1761_s17  ;;  %p1767_p2 = scmp.lt.s32.totalorder %s1761_s17, %s1761_s17 }
   0x6   :  { %p1768_p3 = por %p1767_p2, %p1766_p1 }
   0x8   :  { %p1769_p4 = pnand %p1768_p3, %p1762_p0 }
   0xa   :  { %1772 = shalt.err (!%p1769_p4)
}
   0xb   :  { %26 = dma.hbm_to_vmem [thread:$0]  %s2342_s0, 128, %s24_s14, [#allocation4]  }
   0xc   :  { %s1781_s20 = scalar_lea.vmem %s40_s16, 16  ;;  %s1785_s21 = scalar_lea.vmem %s40_s16, 32 }
   0xd   :  { %p1782_p5 = scmp.ne.s32.totalorder %s40_s16, %s1781_s20  ;;  %p1786_p6 = scmp.lt.s32.totalorder %s40_s16, %s40_s16 }
   0xe   :  { %p1787_p7 = scmp.lt.s32.totalorder %s1785_s21, %s1781_s20 }
  0x10   :  { %p1788_p8 = por %p1787_p7, %p1786_p6 }
  0x12   :  { %p1789_p9 = pnand %p1788_p8, %p1782_p5 }
  0x14   :  { %1792 = shalt.err (!%p1789_p9)
}
  0x15   :  { %42 = dma.hbm_to_vmem [thread:$0]  %s2346_s4, 16, %s40_s16, [#allocation6]  }
  0x16   :  { %1793 = dma.done.wait [#allocation4], 128  }
  0x17   :  { %1794 = vsyncadd [#allocation4], 4294967168 }
  0x18   :  { %1795 = dma.done.wait [#allocation6], 16  }
  0x19   :  { %1796 = vsyncadd [#allocation6], 4294967280  ;;  %v1799_v0 = vmov 0.0   ;;  %vm1800_vm0 = vmmov 0   ;;  %v61_v1 = vld [vmem:[%s2343_s1 + $0x8] sm:$0xff]  ;;  %v60_v2 = vld [vmem:[%s2343_s1] sm:$0xff]  ;;  %v256_v40 = vlaneseq }
  0x1a   :  { %1571 = vmatprep.subr.mxu1 %v1799_v0  ;;  %1575 = vmatprep.mubr.msk.f32.mxu1 %vm1800_vm0, %v1799_v0  ;;  %v59_v3 = vld [vmem:[#allocation3] sm:$0xff]  ;;  %vm69_vm1 = vcmask 130048   ;;  %v153_v4 = vld [vmem:[%s2345_s3 + $0x38] sm:$0xff]  ;;  %v151_v6 = vld [vmem:[%s2345_s3 + $0x28] sm:$0xff]  ;;  %vm161_vm3 = vcmask 523264  }
  0x1b   :  { %333 = vmatprep.mubr.f32.mxu0 %v1799_v0  ;;  %1572 = vmatpush3.msra.mxu1 %v61_v1  ;;  %v152_v5 = vld [vmem:[%s2345_s3 + $0x30] sm:$0xff]  ;;  %v150_v7 = vld [vmem:[%s2345_s3 + $0x20] sm:$0xff]  ;;  %v149_v8 = vld [vmem:[%s2345_s3 + $0x18] sm:$0xff]  ;;  %v257_v41 = vshrl.u32 %v256_v40, 7 }
  0x1c   :  { %1573 = vmatprep.subr.mxu1 %v1799_v0  ;;  %v148_v9 = vld [vmem:[%s2345_s3 + $0x10] sm:$0xff]  ;;  %v147_v10 = vld [vmem:[%s2345_s3 + $0x8] sm:$0xff]  ;;  %v146_v11 = vld [vmem:[%s2345_s3] sm:$0xff] }
  0x1d   :  { %1574 = vmatpush3.msra.mxu1 %v60_v2  ;;  %v253_v12 = vld [vmem:[%s2347_s5 + $0x78] sm:$0xff]  ;;  %v252_v13 = vld [vmem:[%s2347_s5 + $0x70] sm:$0xff]  ;;  %v251_v14 = vld [vmem:[%s2347_s5 + $0x68] sm:$0xff]  ;;  %v258_v42 = vsub.s32 0, %v257_v41  ;;  %v262_v48 = vsub.s32 1, %v257_v41 }
  0x1e   :  { %1576 = vmatmul.mubr.msk.f32.vlgmr.msra.gmra.mxu1 %vm69_vm1, %v59_v3  ;;  %1578 = vmatprep.subr.mxu1 %v1799_v0  ;;  %v250_v15 = vld [vmem:[%s2347_s5 + $0x60] sm:$0xff]  ;;  %v249_v16 = vld [vmem:[%s2347_s5 + $0x58] sm:$0xff]  ;;  %v248_v17 = vld [vmem:[%s2347_s5 + $0x50] sm:$0xff] }
  0x1f   :  { %1579 = vmatpush3.msra.mxu1 %v153_v4  ;;  %1594 = vmatprep.mubr.msk.f32.mxu1 %vm1800_vm0, %v1799_v0  ;;  %v247_v18 = vld [vmem:[%s2347_s5 + $0x48] sm:$0xff]  ;;  %v246_v19 = vld [vmem:[%s2347_s5 + $0x40] sm:$0xff]  ;;  %v245_v20 = vld [vmem:[%s2347_s5 + $0x38] sm:$0xff] }
  0x20   :  { %1580 = vmatprep.subr.mxu1 %v1799_v0  ;;  %285 = vmatprep.subr.mxu0 %v253_v12  ;;  %v244_v21 = vld [vmem:[%s2347_s5 + $0x30] sm:$0xff]  ;;  %v1496_v22 = vld [vmem:[%s2344_s2] ss:$0 sm:$0xff]  ;;  %v243_v28 = vld [vmem:[%s2347_s5 + $0x28] sm:$0xff] }
  0x21   :  { %1581 = vmatpush3.msra.mxu1 %v152_v5  ;;  %286 = vmatpush1.msra.mxu0 %v252_v13  ;;  %v242_v29 = vld [vmem:[%s2347_s5 + $0x20] sm:$0xff]  ;;  %v241_v30 = vld [vmem:[%s2347_s5 + $0x18] sm:$0xff]  ;;  %v240_v31 = vld [vmem:[%s2347_s5 + $0x10] sm:$0xff] }
  0x22   :  { %1582 = vmatprep.subr.mxu1 %v1799_v0  ;;  %287 = vmatprep.subr.mxu0 %v251_v14  ;;  %v239_v32 = vld [vmem:[%s2347_s5 + $0x8] sm:$0xff]  ;;  %v238_v33 = vld [vmem:[%s2347_s5] sm:$0xff]  ;;  %v1498_v34 = vld [vmem:[#allocation5] ss:$0 sm:$0xff]  ;;  %s1801_s5 = smov 64  }
  0x23   :  { %1583 = vmatpush3.msra.mxu1 %v151_v6  ;;  %288 = vmatpush1.msra.mxu0 %v250_v15  ;;  %v254_v43 = vld [vmem:[%s2349_s7] sm:$0x3]  ;;  %v1974_v57 = vld [vmem:[%s2348_s6 + $0x78] sm:$0xff]  ;;  %v1979_v58 = vld [vmem:[%s2348_s6 + $0x70] sm:$0xff] }
  0x24   :  { %1584 = vmatprep.subr.mxu1 %v1799_v0  ;;  %289 = vmatprep.subr.mxu0 %v249_v16  ;;  %v259_v44 = vrot.slane %v254_v43, %v258_v42  ;;  %v263_v49 = vrot.slane %v254_v43, %v262_v48  ;;  %v1984_v59 = vld [vmem:[%s2348_s6 + $0x68] sm:$0xff]  ;;  %v1990_v60 = vld [vmem:[%s2348_s6 + $0x60] sm:$0xff]  ;;  %v1997_v61 = vld [vmem:[%s2348_s6 + $0x58] sm:$0xff] }
  0x25   :  { %1585 = vmatpush3.msra.mxu1 %v150_v7  ;;  %290 = vmatpush1.msra.mxu0 %v248_v17  ;;  %v2004_v62 = vld [vmem:[%s2348_s6 + $0x50] sm:$0xff]  ;;  %v2011_v63 = vld [vmem:[%s2348_s6 + $0x48] sm:$0xff]  ;;  %v2018_v1 = vld [vmem:[%s2348_s6 + $0x40] sm:$0xff] }
  0x26   :  { %1586 = vmatprep.subr.mxu1 %v1799_v0  ;;  %291 = vmatprep.subr.mxu0 %v247_v18  ;;  %v2025_v2 = vld [vmem:[%s2348_s6 + $0x38] sm:$0xff]  ;;  %v2032_v3 = vld [vmem:[%s2348_s6 + $0x30] sm:$0xff]  ;;  %v2039_v4 = vld [vmem:[%s2348_s6 + $0x28] sm:$0xff] }
  0x27   :  { %1587 = vmatpush3.msra.mxu1 %v149_v8  ;;  %292 = vmatpush1.msra.mxu0 %v246_v19  ;;  %v2046_v5 = vld [vmem:[%s2348_s6 + $0x20] sm:$0xff]  ;;  %v2053_v6 = vld [vmem:[%s2348_s6 + $0x18] sm:$0xff]  ;;  %v2060_v7 = vld [vmem:[%s2348_s6 + $0x10] sm:$0xff] }
  0x28   :  { %1588 = vmatprep.subr.mxu1 %v1799_v0  ;;  %293 = vmatprep.subr.mxu0 %v245_v20  ;;  %v2067_v8 = vld [vmem:[%s2348_s6 + $0x8] sm:$0xff] }
  0x29   :  { %1589 = vmatpush3.msra.mxu1 %v148_v9  ;;  %294 = vmatpush1.msra.mxu0 %v244_v21  ;;  %v2074_v9 = vld [vmem:[%s2348_s6] sm:$0xff] }
  0x2a   :  { %1590 = vmatprep.subr.mxu1 %v1799_v0  ;;  %295 = vmatprep.subr.mxu0 %v243_v28 }
  0x2b   :  { %1591 = vmatpush3.msra.mxu1 %v147_v10  ;;  %296 = vmatpush1.msra.mxu0 %v242_v29 }
  0x2c   :  { %1592 = vmatprep.subr.mxu1 %v1799_v0  ;;  %297 = vmatprep.subr.mxu0 %v241_v30 }
  0x2d   :  { %1593 = vmatpush3.msra.mxu1 %v146_v11  ;;  %298 = vmatpush1.msra.mxu0 %v240_v31 }
  0x2e   :  { %299 = vmatprep.subr.mxu0 %v239_v32  ;;  %401 = vmatprep.subr.mxu1 %v1974_v57 }
  0x2f   :  { %300 = vmatpush1.msra.mxu0 %v238_v33 }
  0x30   :  { %504 = vmatprep.subr.mxu0 %v1974_v57 }
  0xde   :  { %v139_v23 = vpop.f32.mrf.mxu1 }
  0xdf   :  { %v140_v24 = vadd.f32 %v1496_v22, %v139_v23 }
  0xe0   :  { %v1577_v25 = vpop.f32.mrf.mxu1 }
  0xe1   :  { %vm143_vm2 = vcmp.ge.f32.partialorder %v140_v24, 0.0  ;;  %v144_v26 = vmul.f32 0.01, %v140_v24 }
  0xe3   :  { %v145_v27 = vsel %vm143_vm2, %v140_v24, %v144_v26 }
  0xe4   :  { %1595 = vmatmul.mubr.msk.f32.vlgmr.msra.gmra.mxu1 %vm161_vm3, %v145_v27 }
  0xe5   :  { %449 = vmatprep.mubr.f32.mxu1 %v1799_v0  ;;  %402 = vmatpush1.msra.mxu1 %v1979_v58 }
  0xe6   :  { %403 = vmatprep.subr.mxu1 %v1984_v59 }
  0xe7   :  { %404 = vmatpush1.msra.mxu1 %v1990_v60 }
  0xe8   :  { %405 = vmatprep.subr.mxu1 %v1997_v61 }
  0xe9   :  { %406 = vmatpush1.msra.mxu1 %v2004_v62 }
  0xea   :  { %407 = vmatprep.subr.mxu1 %v2011_v63 }
  0xeb   :  { %408 = vmatpush1.msra.mxu1 %v2018_v1 }
  0xec   :  { %409 = vmatprep.subr.mxu1 %v2025_v2 }
  0xed   :  { %410 = vmatpush1.msra.mxu1 %v2032_v3 }
  0xee   :  { %411 = vmatprep.subr.mxu1 %v2039_v4 }
  0xef   :  { %412 = vmatpush1.msra.mxu1 %v2046_v5 }
  0xf0   :  { %413 = vmatprep.subr.mxu1 %v2053_v6 }
  0xf1   :  { %414 = vmatpush1.msra.mxu1 %v2060_v7 }
  0xf2   :  { %415 = vmatprep.subr.mxu1 %v2067_v8 }
  0xf3   :  { %416 = vmatpush1.msra.mxu1 %v2074_v9 }
  0xf4   :  { %607 = vmatprep.subr.mxu1 %v1974_v57 }
 0x1a4   :  { %v231_v35 = vpop.f32.mrf.mxu1 }
 0x1a5   :  { %v232_v36 = vadd.f32 %v1498_v34, %v231_v35 }
 0x1a6   :  { %v1596_v37 = vpop.f32.mrf.mxu1 }
 0x1a7   :  { %vm235_vm4 = vcmp.ge.f32.partialorder %v232_v36, 0.0  ;;  %v236_v38 = vmul.f32 0.01, %v232_v36 }
 0x1a9   :  { %v237_v39 = vsel %vm235_vm4, %v232_v36, %v236_v38 }
 0x1aa   :  { %1500 = vmatmul.mubr.msk.f32.vlgmr.msra.gmra.mxu0 %vm161_vm3, %v237_v39 }
 0x1ab   :  { %552 = vmatprep.mubr.f32.mxu0 %v1799_v0  ;;  %505 = vmatpush1.msra.mxu0 %v1979_v58 }
 0x1ac   :  { %506 = vmatprep.subr.mxu0 %v1984_v59 }
 0x1ad   :  { %507 = vmatpush1.msra.mxu0 %v1990_v60 }
 0x1ae   :  { %508 = vmatprep.subr.mxu0 %v1997_v61 }
 0x1af   :  { %509 = vmatpush1.msra.mxu0 %v2004_v62 }
 0x1b0   :  { %510 = vmatprep.subr.mxu0 %v2011_v63 }
 0x1b1   :  { %511 = vmatpush1.msra.mxu0 %v2018_v1 }
 0x1b2   :  { %512 = vmatprep.subr.mxu0 %v2025_v2 }
 0x1b3   :  { %513 = vmatpush1.msra.mxu0 %v2032_v3 }
 0x1b4   :  { %514 = vmatprep.subr.mxu0 %v2039_v4 }
 0x1b5   :  { %515 = vmatpush1.msra.mxu0 %v2046_v5 }
 0x1b6   :  { %516 = vmatprep.subr.mxu0 %v2053_v6 }
 0x1b7   :  { %517 = vmatpush1.msra.mxu0 %v2060_v7 }
 0x1b8   :  { %518 = vmatprep.subr.mxu0 %v2067_v8 }
 0x1b9   :  { %519 = vmatpush1.msra.mxu0 %v2074_v9 }
 0x1ba   :  { %710 = vmatprep.subr.mxu0 %v1974_v57 }
 0x26a   :  { %v335_v45 = vpop.f32.mrf.mxu0 }
 0x26b   :  { %v1964_v46 = vadd.f32 %v335_v45, %v259_v44 }
 0x26c   :  { %v337_v50 = vpop.f32.mrf.mxu0 }
 0x26d   :  { %v1501_v47 = vmul.f32 -1.442695, %v1964_v46  ;;  %v1967_v51 = vadd.f32 %v337_v50, %v263_v49 }
 0x26f   :  { %1633 = vpow2.f32 %v1501_v47  ;;  %v1502_v10 = vmul.f32 -1.442695, %v1967_v51 }
 0x270   :  { %1635 = vtanh.f32 %v1967_v51 }
 0x27c   :  { %v1634_v52 = vpop.eup %1633 }
 0x27d   :  { %v359_v53 = vadd.f32 1.0, %v1634_v52  ;;  %v1636_v54 = vpop.eup %1635 }
 0x27f   :  { %1637 = vrcp.f32 %v359_v53 }
 0x280   :  { %1639 = vpow2.f32 %v1502_v10 }
 0x28c   :  { %v1638_v55 = vpop.eup %1637 }
 0x28d   :  { %v370_v56 = vmul.f32 %v1638_v55, %v1636_v54  ;;  %v1640_v11 = vpop.eup %1639  ;;  %v369_v13 = vmul.f32 0.0, %v1638_v55 }
 0x28e   :  { %v366_v12 = vadd.f32 1.0, %v1640_v11 }
 0x28f   :  { %372 = vrot.lane.b32.xlu0 %v370_v56, %s1801_s5 }
 0x290   :  { %1641 = vrcp.f32 %v366_v12 }
 0x29d   :  { %v1642_v16 = vpop.eup %1641 }
 0x301   :  { %v373_v14 = vpop.permute.xlu0 %372 }
 0x302   :  { %v375_v15 = vadd.f32 %v373_v14, %v369_v13 }
 0x304   :  { %1643 = vtanh.f32 %v375_v15 }
 0x311   :  { %v1644_v17 = vpop.eup %1643 }
 0x312   :  { %v377_v18 = vmul.f32 %v1644_v17, %v1642_v16 }
 0x314   :  { %379 = vrot.lane.b32.xlu0 %v377_v18, %s1801_s5 }
 0x386   :  { %v380_v19 = vpop.permute.xlu0 %379 }
 0x387   :  { %382 = vst.msk [vmem:[#allocation2] sm:$0xff] %vm161_vm3, %v380_v19  ;;  %1503 = vmatmul.mubr.msk.f32.vlgmr.msra.gmra.mxu1 %vm161_vm3, %v380_v19 }
 0x388   :  { %608 = vmatpush1.msra.mxu1 %v1979_v58  ;;  %655 = vmatprep.mubr.f32.mxu1 %v1799_v0 }
 0x389   :  { %609 = vmatprep.subr.mxu1 %v1984_v59 }
 0x38a   :  { %610 = vmatpush1.msra.mxu1 %v1990_v60 }
 0x38b   :  { %611 = vmatprep.subr.mxu1 %v1997_v61 }
 0x38c   :  { %612 = vmatpush1.msra.mxu1 %v2004_v62 }
 0x38d   :  { %613 = vmatprep.subr.mxu1 %v2011_v63 }
 0x38e   :  { %614 = vmatpush1.msra.mxu1 %v2018_v1 }
 0x38f   :  { %615 = vmatprep.subr.mxu1 %v2025_v2 }
 0x390   :  { %616 = vmatpush1.msra.mxu1 %v2032_v3 }
 0x391   :  { %617 = vmatprep.subr.mxu1 %v2039_v4 }
 0x392   :  { %618 = vmatpush1.msra.mxu1 %v2046_v5 }
 0x393   :  { %619 = vmatprep.subr.mxu1 %v2053_v6 }
 0x394   :  { %620 = vmatpush1.msra.mxu1 %v2060_v7 }
 0x395   :  { %621 = vmatprep.subr.mxu1 %v2067_v8 }
 0x396   :  { %622 = vmatpush1.msra.mxu1 %v2074_v9 }
 0x397   :  { %813 = vmatprep.subr.mxu1 %v1974_v57 }
 0x447   :  { %v451_v20 = vpop.f32.mrf.mxu1 }
 0x448   :  { %v456_v21 = vadd.f32 %v451_v20, %v1964_v46 }
 0x449   :  { %v453_v23 = vpop.f32.mrf.mxu1 }
 0x44a   :  { %v1504_v22 = vmul.f32 -1.442695, %v456_v21  ;;  %v457_v24 = vadd.f32 %v453_v23, %v1967_v51 }
 0x44c   :  { %1645 = vpow2.f32 %v1504_v22  ;;  %v1505_v30 = vmul.f32 -1.442695, %v457_v24 }
 0x44d   :  { %1647 = vtanh.f32 %v457_v24 }
 0x459   :  { %v1646_v25 = vpop.eup %1645 }
 0x45a   :  { %v461_v26 = vadd.f32 1.0, %v1646_v25  ;;  %v1648_v27 = vpop.eup %1647 }
 0x45c   :  { %1649 = vrcp.f32 %v461_v26 }
 0x45d   :  { %1651 = vpow2.f32 %v1505_v30 }
 0x469   :  { %v1650_v28 = vpop.eup %1649 }
 0x46a   :  { %v472_v29 = vmul.f32 %v1650_v28, %v1648_v27  ;;  %v1652_v31 = vpop.eup %1651  ;;  %v471_v33 = vmul.f32 %v1650_v28, %v375_v15 }
 0x46b   :  { %v468_v32 = vadd.f32 1.0, %v1652_v31 }
 0x46c   :  { %474 = vrot.lane.b32.xlu1 %v472_v29, %s1801_s5 }
 0x46d   :  { %1653 = vrcp.f32 %v468_v32 }
 0x47a   :  { %v1654_v36 = vpop.eup %1653 }
 0x4de   :  { %v475_v34 = vpop.permute.xlu1 %474 }
 0x4df   :  { %v477_v35 = vadd.f32 %v475_v34, %v471_v33 }
 0x4e1   :  { %1655 = vtanh.f32 %v477_v35 }
 0x4ee   :  { %v1656_v37 = vpop.eup %1655 }
 0x4ef   :  { %v479_v38 = vmul.f32 %v1656_v37, %v1654_v36 }
 0x4f1   :  { %481 = vrot.lane.b32.xlu1 %v479_v38, %s1801_s5 }
 0x563   :  { %v482_v39 = vpop.permute.xlu1 %481 }
 0x564   :  { %485 = vst.msk [vmem:[#allocation2 + $0x8] sm:$0xff] %vm161_vm3, %v482_v39  ;;  %1506 = vmatmul.mubr.msk.f32.vlgmr.msra.gmra.mxu0 %vm161_vm3, %v482_v39 }
 0x565   :  { %711 = vmatpush1.msra.mxu0 %v1979_v58  ;;  %758 = vmatprep.mubr.f32.mxu0 %v1799_v0 }
 0x566   :  { %712 = vmatprep.subr.mxu0 %v1984_v59 }
 0x567   :  { %713 = vmatpush1.msra.mxu0 %v1990_v60 }
 0x568   :  { %714 = vmatprep.subr.mxu0 %v1997_v61 }
 0x569   :  { %715 = vmatpush1.msra.mxu0 %v2004_v62 }
 0x56a   :  { %716 = vmatprep.subr.mxu0 %v2011_v63 }
 0x56b   :  { %717 = vmatpush1.msra.mxu0 %v2018_v1 }
 0x56c   :  { %718 = vmatprep.subr.mxu0 %v2025_v2 }
 0x56d   :  { %719 = vmatpush1.msra.mxu0 %v2032_v3 }
 0x56e   :  { %720 = vmatprep.subr.mxu0 %v2039_v4 }
 0x56f   :  { %721 = vmatpush1.msra.mxu0 %v2046_v5 }
 0x570   :  { %722 = vmatprep.subr.mxu0 %v2053_v6 }
 0x571   :  { %723 = vmatpush1.msra.mxu0 %v2060_v7 }
 0x572   :  { %724 = vmatprep.subr.mxu0 %v2067_v8 }
 0x573   :  { %725 = vmatpush1.msra.mxu0 %v2074_v9 }
 0x574   :  { %916 = vmatprep.subr.mxu0 %v1974_v57 }
 0x624   :  { %v554_v40 = vpop.f32.mrf.mxu0 }
 0x625   :  { %v559_v41 = vadd.f32 %v554_v40, %v1964_v46 }
 0x626   :  { %v556_v43 = vpop.f32.mrf.mxu0 }
 0x627   :  { %v1507_v42 = vmul.f32 -1.442695, %v559_v41  ;;  %v560_v44 = vadd.f32 %v556_v43, %v1967_v51 }
 0x629   :  { %1657 = vpow2.f32 %v1507_v42  ;;  %v1508_v52 = vmul.f32 -1.442695, %v560_v44 }
 0x62a   :  { %1659 = vtanh.f32 %v560_v44 }
 0x636   :  { %v1658_v45 = vpop.eup %1657 }
 0x637   :  { %v564_v47 = vadd.f32 1.0, %v1658_v45  ;;  %v1660_v48 = vpop.eup %1659 }
 0x639   :  { %1661 = vrcp.f32 %v564_v47 }
 0x63a   :  { %1663 = vpow2.f32 %v1508_v52 }
 0x646   :  { %v1662_v49 = vpop.eup %1661 }
 0x647   :  { %v575_v50 = vmul.f32 %v1662_v49, %v1660_v48  ;;  %v1664_v53 = vpop.eup %1663  ;;  %v574_v55 = vmul.f32 %v1662_v49, %v477_v35 }
 0x648   :  { %v571_v54 = vadd.f32 1.0, %v1664_v53 }
 0x649   :  { %577 = vrot.lane.b32.xlu0 %v575_v50, %s1801_s5 }
 0x64a   :  { %1665 = vrcp.f32 %v571_v54 }
 0x657   :  { %v1666_v11 = vpop.eup %1665 }
 0x6bb   :  { %v578_v56 = vpop.permute.xlu0 %577 }
 0x6bc   :  { %v580_v10 = vadd.f32 %v578_v56, %v574_v55 }
 0x6be   :  { %1667 = vtanh.f32 %v580_v10 }
 0x6cb   :  { %v1668_v12 = vpop.eup %1667 }
 0x6cc   :  { %v582_v13 = vmul.f32 %v1668_v12, %v1666_v11 }
 0x6ce   :  { %584 = vrot.lane.b32.xlu1 %v582_v13, %s1801_s5 }
 0x740   :  { %v585_v14 = vpop.permute.xlu1 %584 }
 0x741   :  { %588 = vst.msk [vmem:[#allocation2 + $0x10] sm:$0xff] %vm161_vm3, %v585_v14  ;;  %1509 = vmatmul.mubr.msk.f32.vlgmr.msra.gmra.mxu1 %vm161_vm3, %v585_v14 }
 0x742   :  { %814 = vmatpush1.msra.mxu1 %v1979_v58  ;;  %861 = vmatprep.mubr.f32.mxu1 %v1799_v0 }
 0x743   :  { %815 = vmatprep.subr.mxu1 %v1984_v59 }
 0x744   :  { %816 = vmatpush1.msra.mxu1 %v1990_v60 }
 0x745   :  { %817 = vmatprep.subr.mxu1 %v1997_v61 }
 0x746   :  { %818 = vmatpush1.msra.mxu1 %v2004_v62 }
 0x747   :  { %819 = vmatprep.subr.mxu1 %v2011_v63 }
 0x748   :  { %820 = vmatpush1.msra.mxu1 %v2018_v1 }
 0x749   :  { %821 = vmatprep.subr.mxu1 %v2025_v2 }
 0x74a   :  { %822 = vmatpush1.msra.mxu1 %v2032_v3 }
 0x74b   :  { %823 = vmatprep.subr.mxu1 %v2039_v4 }
 0x74c   :  { %824 = vmatpush1.msra.mxu1 %v2046_v5 }
 0x74d   :  { %825 = vmatprep.subr.mxu1 %v2053_v6 }
 0x74e   :  { %826 = vmatpush1.msra.mxu1 %v2060_v7 }
 0x74f   :  { %827 = vmatprep.subr.mxu1 %v2067_v8 }
 0x750   :  { %828 = vmatpush1.msra.mxu1 %v2074_v9 }
 0x751   :  { %1019 = vmatprep.subr.mxu1 %v1974_v57 }
 0x801   :  { %v657_v15 = vpop.f32.mrf.mxu1 }
 0x802   :  { %v662_v16 = vadd.f32 %v657_v15, %v1964_v46 }
 0x803   :  { %v659_v18 = vpop.f32.mrf.mxu1 }
 0x804   :  { %v1510_v17 = vmul.f32 -1.442695, %v662_v16  ;;  %v663_v19 = vadd.f32 %v659_v18, %v1967_v51 }
 0x806   :  { %1669 = vpow2.f32 %v1510_v17  ;;  %v1511_v25 = vmul.f32 -1.442695, %v663_v19 }
 0x807   :  { %1671 = vtanh.f32 %v663_v19 }
 0x813   :  { %v1670_v20 = vpop.eup %1669 }
 0x814   :  { %v667_v21 = vadd.f32 1.0, %v1670_v20  ;;  %v1672_v22 = vpop.eup %1671 }
 0x816   :  { %1673 = vrcp.f32 %v667_v21 }
 0x817   :  { %1675 = vpow2.f32 %v1511_v25 }
 0x823   :  { %v1674_v23 = vpop.eup %1673 }
 0x824   :  { %v678_v24 = vmul.f32 %v1674_v23, %v1672_v22  ;;  %v1676_v26 = vpop.eup %1675  ;;  %v677_v28 = vmul.f32 %v1674_v23, %v580_v10 }
 0x825   :  { %v674_v27 = vadd.f32 1.0, %v1676_v26 }
 0x826   :  { %680 = vrot.lane.b32.xlu0 %v678_v24, %s1801_s5 }
 0x827   :  { %1677 = vrcp.f32 %v674_v27 }
 0x834   :  { %v1678_v31 = vpop.eup %1677 }
 0x898   :  { %v681_v29 = vpop.permute.xlu0 %680 }
 0x899   :  { %v683_v30 = vadd.f32 %v681_v29, %v677_v28 }
 0x89b   :  { %1679 = vtanh.f32 %v683_v30 }
 0x8a8   :  { %v1680_v32 = vpop.eup %1679 }
 0x8a9   :  { %v685_v33 = vmul.f32 %v1680_v32, %v1678_v31 }
 0x8ab   :  { %687 = vrot.lane.b32.xlu1 %v685_v33, %s1801_s5 }
 0x91d   :  { %v688_v34 = vpop.permute.xlu1 %687 }
 0x91e   :  { %691 = vst.msk [vmem:[#allocation2 + $0x18] sm:$0xff] %vm161_vm3, %v688_v34  ;;  %1512 = vmatmul.mubr.msk.f32.vlgmr.msra.gmra.mxu0 %vm161_vm3, %v688_v34 }
 0x91f   :  { %917 = vmatpush1.msra.mxu0 %v1979_v58  ;;  %964 = vmatprep.mubr.f32.mxu0 %v1799_v0 }
 0x920   :  { %918 = vmatprep.subr.mxu0 %v1984_v59 }
 0x921   :  { %919 = vmatpush1.msra.mxu0 %v1990_v60 }
 0x922   :  { %920 = vmatprep.subr.mxu0 %v1997_v61 }
 0x923   :  { %921 = vmatpush1.msra.mxu0 %v2004_v62 }
 0x924   :  { %922 = vmatprep.subr.mxu0 %v2011_v63 }
 0x925   :  { %923 = vmatpush1.msra.mxu0 %v2018_v1 }
 0x926   :  { %924 = vmatprep.subr.mxu0 %v2025_v2 }
 0x927   :  { %925 = vmatpush1.msra.mxu0 %v2032_v3 }
 0x928   :  { %926 = vmatprep.subr.mxu0 %v2039_v4 }
 0x929   :  { %927 = vmatpush1.msra.mxu0 %v2046_v5 }
 0x92a   :  { %928 = vmatprep.subr.mxu0 %v2053_v6 }
 0x92b   :  { %929 = vmatpush1.msra.mxu0 %v2060_v7 }
 0x92c   :  { %930 = vmatprep.subr.mxu0 %v2067_v8 }
 0x92d   :  { %931 = vmatpush1.msra.mxu0 %v2074_v9 }
 0x92e   :  { %1122 = vmatprep.subr.mxu0 %v1974_v57 }
 0x9de   :  { %v760_v35 = vpop.f32.mrf.mxu0 }
 0x9df   :  { %v765_v36 = vadd.f32 %v760_v35, %v1964_v46 }
 0x9e0   :  { %v762_v38 = vpop.f32.mrf.mxu0 }
 0x9e1   :  { %v1513_v37 = vmul.f32 -1.442695, %v765_v36  ;;  %v766_v39 = vadd.f32 %v762_v38, %v1967_v51 }
 0x9e3   :  { %1681 = vpow2.f32 %v1513_v37  ;;  %v1514_v45 = vmul.f32 -1.442695, %v766_v39 }
 0x9e4   :  { %1683 = vtanh.f32 %v766_v39 }
 0x9f0   :  { %v1682_v40 = vpop.eup %1681 }
 0x9f1   :  { %v770_v41 = vadd.f32 1.0, %v1682_v40  ;;  %v1684_v42 = vpop.eup %1683 }
 0x9f3   :  { %1685 = vrcp.f32 %v770_v41 }
 0x9f4   :  { %1687 = vpow2.f32 %v1514_v45 }
 0xa00   :  { %v1686_v43 = vpop.eup %1685 }
 0xa01   :  { %v781_v44 = vmul.f32 %v1686_v43, %v1684_v42  ;;  %v1688_v47 = vpop.eup %1687  ;;  %v780_v49 = vmul.f32 %v1686_v43, %v683_v30 }
 0xa02   :  { %v777_v48 = vadd.f32 1.0, %v1688_v47 }
 0xa03   :  { %783 = vrot.lane.b32.xlu0 %v781_v44, %s1801_s5 }
 0xa04   :  { %1689 = vrcp.f32 %v777_v48 }
 0xa11   :  { %v1690_v53 = vpop.eup %1689 }
 0xa75   :  { %v784_v50 = vpop.permute.xlu0 %783 }
 0xa76   :  { %v786_v52 = vadd.f32 %v784_v50, %v780_v49 }
 0xa78   :  { %1691 = vtanh.f32 %v786_v52 }
 0xa85   :  { %v1692_v54 = vpop.eup %1691 }
 0xa86   :  { %v788_v55 = vmul.f32 %v1692_v54, %v1690_v53 }
 0xa88   :  { %790 = vrot.lane.b32.xlu1 %v788_v55, %s1801_s5 }
 0xafa   :  { %v791_v56 = vpop.permute.xlu1 %790 }
 0xafb   :  { %794 = vst.msk [vmem:[#allocation2 + $0x20] sm:$0xff] %vm161_vm3, %v791_v56  ;;  %1515 = vmatmul.mubr.msk.f32.vlgmr.msra.gmra.mxu1 %vm161_vm3, %v791_v56  ;;  %v1326_v56 = vld [vmem:[%s2350_s8 + $0x30] sm:$0xff] }
 0xafc   :  { %1020 = vmatpush1.msra.mxu1 %v1979_v58  ;;  %1067 = vmatprep.mubr.f32.mxu1 %v1799_v0 }
 0xafd   :  { %1021 = vmatprep.subr.mxu1 %v1984_v59 }
 0xafe   :  { %1022 = vmatpush1.msra.mxu1 %v1990_v60 }
 0xaff   :  { %1023 = vmatprep.subr.mxu1 %v1997_v61 }
 0xb00   :  { %1024 = vmatpush1.msra.mxu1 %v2004_v62 }
 0xb01   :  { %1025 = vmatprep.subr.mxu1 %v2011_v63 }
 0xb02   :  { %1026 = vmatpush1.msra.mxu1 %v2018_v1 }
 0xb03   :  { %1027 = vmatprep.subr.mxu1 %v2025_v2 }
 0xb04   :  { %1028 = vmatpush1.msra.mxu1 %v2032_v3 }
 0xb05   :  { %1029 = vmatprep.subr.mxu1 %v2039_v4 }
 0xb06   :  { %1030 = vmatpush1.msra.mxu1 %v2046_v5 }
 0xb07   :  { %1031 = vmatprep.subr.mxu1 %v2053_v6 }
 0xb08   :  { %1032 = vmatpush1.msra.mxu1 %v2060_v7 }
 0xb09   :  { %1033 = vmatprep.subr.mxu1 %v2067_v8 }
 0xb0a   :  { %1034 = vmatpush1.msra.mxu1 %v2074_v9 }
 0xb0b   :  { %1225 = vmatprep.subr.mxu1 %v1974_v57 }
 0xbbb   :  { %v863_v10 = vpop.f32.mrf.mxu1 }
 0xbbc   :  { %v868_v11 = vadd.f32 %v863_v10, %v1964_v46  ;;  %v1310_v10 = vld [vmem:[#allocation2] sm:$0xff] }
 0xbbd   :  { %v865_v13 = vpop.f32.mrf.mxu1 }
 0xbbe   :  { %v1516_v12 = vmul.f32 -1.442695, %v868_v11  ;;  %v869_v14 = vadd.f32 %v865_v13, %v1967_v51  ;;  %v1325_v11 = vld [vmem:[%s2350_s8 + $0x28] sm:$0xff]  ;;  %v1323_v13 = vld [vmem:[%s2350_s8 + $0x18] sm:$0xff] }
 0xbc0   :  { %1693 = vpow2.f32 %v1516_v12  ;;  %v1517_v20 = vmul.f32 -1.442695, %v869_v14  ;;  %v1324_v12 = vld [vmem:[%s2350_s8 + $0x20] sm:$0xff] }
 0xbc1   :  { %1695 = vtanh.f32 %v869_v14  ;;  %v1322_v14 = vld [vmem:[%s2350_s8 + $0x10] sm:$0xff] }
 0xbcd   :  { %v1694_v15 = vpop.eup %1693 }
 0xbce   :  { %v873_v16 = vadd.f32 1.0, %v1694_v15  ;;  %v1696_v17 = vpop.eup %1695  ;;  %v1321_v15 = vld [vmem:[%s2350_s8 + $0x8] sm:$0xff] }
 0xbd0   :  { %1697 = vrcp.f32 %v873_v16  ;;  %v1320_v16 = vld [vmem:[%s2350_s8] sm:$0xff] }
 0xbd1   :  { %1699 = vpow2.f32 %v1517_v20  ;;  %v1314_v20 = vld [vmem:[#allocation2 + $0x20] sm:$0xff] }
 0xbdd   :  { %v1698_v18 = vpop.eup %1697 }
 0xbde   :  { %v884_v19 = vmul.f32 %v1698_v18, %v1696_v17  ;;  %v1700_v57 = vpop.eup %1699  ;;  %v883_v22 = vmul.f32 %v1698_v18, %v786_v52  ;;  %v1311_v17 = vld [vmem:[#allocation2 + $0x8] sm:$0xff]  ;;  %v1312_v18 = vld [vmem:[#allocation2 + $0x10] sm:$0xff] }
 0xbdf   :  { %v880_v21 = vadd.f32 1.0, %v1700_v57 }
 0xbe0   :  { %886 = vrot.lane.b32.xlu0 %v884_v19, %s1801_s5  ;;  %v1313_v19 = vld [vmem:[#allocation2 + $0x18] sm:$0xff] }
 0xbe1   :  { %1701 = vrcp.f32 %v880_v21 }
 0xbee   :  { %v1702_v25 = vpop.eup %1701 }
 0xc52   :  { %v887_v23 = vpop.permute.xlu0 %886 }
 0xc53   :  { %v889_v24 = vadd.f32 %v887_v23, %v883_v22 }
 0xc55   :  { %1703 = vtanh.f32 %v889_v24 }
 0xc62   :  { %v1704_v26 = vpop.eup %1703 }
 0xc63   :  { %v891_v27 = vmul.f32 %v1704_v26, %v1702_v25 }
 0xc65   :  { %893 = vrot.lane.b32.xlu1 %v891_v27, %s1801_s5  ;;  %v2287_v27 = vld [vmem:[%s2351_s9] ss:$0 sm:$0xff] }
 0xcd7   :  { %v894_v28 = vpop.permute.xlu1 %893 }
 0xcd8   :  { %897 = vst.msk [vmem:[#allocation2 + $0x28] sm:$0xff] %vm161_vm3, %v894_v28  ;;  %1518 = vmatmul.mubr.msk.f32.vlgmr.msra.gmra.mxu0 %vm161_vm3, %v894_v28 }
 0xcd9   :  { %1123 = vmatpush1.msra.mxu0 %v1979_v58  ;;  %1170 = vmatprep.mubr.f32.mxu0 %v1799_v0 }
 0xcda   :  { %1124 = vmatprep.subr.mxu0 %v1984_v59 }
 0xcdb   :  { %1125 = vmatpush1.msra.mxu0 %v1990_v60 }
 0xcdc   :  { %1126 = vmatprep.subr.mxu0 %v1997_v61 }
 0xcdd   :  { %1127 = vmatpush1.msra.mxu0 %v2004_v62 }
 0xcde   :  { %1128 = vmatprep.subr.mxu0 %v2011_v63 }
 0xcdf   :  { %1129 = vmatpush1.msra.mxu0 %v2018_v1  ;;  %v1315_v57 = vld [vmem:[#allocation2 + $0x28] sm:$0xff] }
 0xce0   :  { %1130 = vmatprep.subr.mxu0 %v2025_v2 }
 0xce1   :  { %1131 = vmatpush1.msra.mxu0 %v2032_v3 }
 0xce2   :  { %1132 = vmatprep.subr.mxu0 %v2039_v4 }
 0xce3   :  { %1133 = vmatpush1.msra.mxu0 %v2046_v5 }
 0xce4   :  { %1134 = vmatprep.subr.mxu0 %v2053_v6 }
 0xce5   :  { %1135 = vmatpush1.msra.mxu0 %v2060_v7 }
 0xce6   :  { %1136 = vmatprep.subr.mxu0 %v2067_v8 }
 0xce7   :  { %1137 = vmatpush1.msra.mxu0 %v2074_v9 }
 0xd98   :  { %v966_v29 = vpop.f32.mrf.mxu0 }
 0xd99   :  { %v971_v30 = vadd.f32 %v966_v29, %v1964_v46 }
 0xd9a   :  { %v968_v32 = vpop.f32.mrf.mxu0 }
 0xd9b   :  { %v1519_v31 = vmul.f32 -1.442695, %v971_v30  ;;  %v972_v33 = vadd.f32 %v968_v32, %v1967_v51 }
 0xd9d   :  { %1705 = vpow2.f32 %v1519_v31  ;;  %v1520_v39 = vmul.f32 -1.442695, %v972_v33 }
 0xd9e   :  { %1707 = vtanh.f32 %v972_v33 }
 0xdaa   :  { %v1706_v34 = vpop.eup %1705 }
 0xdab   :  { %v976_v35 = vadd.f32 1.0, %v1706_v34  ;;  %v1708_v36 = vpop.eup %1707 }
 0xdad   :  { %1709 = vrcp.f32 %v976_v35 }
 0xdae   :  { %1711 = vpow2.f32 %v1520_v39 }
 0xdba   :  { %v1710_v37 = vpop.eup %1709 }
 0xdbb   :  { %v987_v38 = vmul.f32 %v1710_v37, %v1708_v36  ;;  %v1712_v40 = vpop.eup %1711  ;;  %v986_v42 = vmul.f32 %v1710_v37, %v889_v24 }
 0xdbc   :  { %v983_v41 = vadd.f32 1.0, %v1712_v40 }
 0xdbd   :  { %989 = vrot.lane.b32.xlu0 %v987_v38, %s1801_s5 }
 0xdbe   :  { %1713 = vrcp.f32 %v983_v41 }
 0xdcb   :  { %v1714_v45 = vpop.eup %1713 }
 0xe2f   :  { %v990_v43 = vpop.permute.xlu0 %989 }
 0xe30   :  { %v992_v44 = vadd.f32 %v990_v43, %v986_v42 }
 0xe32   :  { %1715 = vtanh.f32 %v992_v44 }
 0xe3f   :  { %v1716_v47 = vpop.eup %1715 }
 0xe40   :  { %v994_v48 = vmul.f32 %v1716_v47, %v1714_v45 }
 0xe42   :  { %996 = vrot.lane.b32.xlu1 %v994_v48, %s1801_s5 }
 0xeb4   :  { %v997_v49 = vpop.permute.xlu1 %996 }
 0xeb5   :  { %1000 = vst.msk [vmem:[#allocation2 + $0x30] sm:$0xff] %vm161_vm3, %v997_v49  ;;  %1521 = vmatmul.mubr.msk.f32.vlgmr.msra.gmra.mxu1 %vm161_vm3, %v997_v49 }
 0xeb6   :  { %1226 = vmatpush1.msra.mxu1 %v1979_v58  ;;  %1273 = vmatprep.mubr.f32.mxu1 %v1799_v0 }
 0xeb7   :  { %1227 = vmatprep.subr.mxu1 %v1984_v59 }
 0xeb8   :  { %1228 = vmatpush1.msra.mxu1 %v1990_v60 }
 0xeb9   :  { %1229 = vmatprep.subr.mxu1 %v1997_v61 }
 0xeba   :  { %1230 = vmatpush1.msra.mxu1 %v2004_v62 }
 0xebb   :  { %1231 = vmatprep.subr.mxu1 %v2011_v63 }
 0xebc   :  { %1232 = vmatpush1.msra.mxu1 %v2018_v1  ;;  %v1316_v21 = vld [vmem:[#allocation2 + $0x30] sm:$0xff] }
 0xebd   :  { %1233 = vmatprep.subr.mxu1 %v2025_v2 }
 0xebe   :  { %1234 = vmatpush1.msra.mxu1 %v2032_v3 }
 0xebf   :  { %1235 = vmatprep.subr.mxu1 %v2039_v4  ;;  %v1327_v4 = vld [vmem:[%s2350_s8 + $0x38] sm:$0xff] }
 0xec0   :  { %1236 = vmatpush1.msra.mxu1 %v2046_v5  ;;  %1597 = vmatprep.subr.mxu0 %v1327_v4 }
 0xec1   :  { %1237 = vmatprep.subr.mxu1 %v2053_v6 }
 0xec2   :  { %1238 = vmatpush1.msra.mxu1 %v2060_v7 }
 0xec3   :  { %1239 = vmatprep.subr.mxu1 %v2067_v8 }
 0xec4   :  { %1240 = vmatpush1.msra.mxu1 %v2074_v9 }
 0xf75   :  { %v1069_v0 = vpop.f32.mrf.mxu1 }
 0xf76   :  { %v1074_v58 = vadd.f32 %v1069_v0, %v1964_v46 }
 0xf77   :  { %v1071_v60 = vpop.f32.mrf.mxu1 }
 0xf78   :  { %v1522_v59 = vmul.f32 -1.442695, %v1074_v58  ;;  %v1075_v61 = vadd.f32 %v1071_v60, %v1967_v51 }
 0xf7a   :  { %1717 = vpow2.f32 %v1522_v59  ;;  %v1523_v5 = vmul.f32 -1.442695, %v1075_v61 }
 0xf7b   :  { %1719 = vtanh.f32 %v1075_v61 }
 0xf87   :  { %v1718_v62 = vpop.eup %1717 }
 0xf88   :  { %v1079_v63 = vadd.f32 1.0, %v1718_v62  ;;  %v1720_v1 = vpop.eup %1719 }
 0xf8a   :  { %1721 = vrcp.f32 %v1079_v63 }
 0xf8b   :  { %1723 = vpow2.f32 %v1523_v5 }
 0xf97   :  { %v1722_v2 = vpop.eup %1721 }
 0xf98   :  { %v1090_v3 = vmul.f32 %v1722_v2, %v1720_v1  ;;  %v1724_v6 = vpop.eup %1723  ;;  %v1089_v8 = vmul.f32 %v1722_v2, %v992_v44 }
 0xf99   :  { %v1086_v7 = vadd.f32 1.0, %v1724_v6 }
 0xf9a   :  { %1092 = vrot.lane.b32.xlu0 %v1090_v3, %s1801_s5 }
 0xf9b   :  { %1725 = vrcp.f32 %v1086_v7 }
 0xfa8   :  { %v1726_v52 = vpop.eup %1725 }
0x100c   :  { %v1093_v9 = vpop.permute.xlu0 %1092 }
0x100d   :  { %v2248_v50 = vadd.f32 %v1093_v9, %v1089_v8 }
0x100f   :  { %1727 = vtanh.f32 %v2248_v50 }
0x101c   :  { %v1728_v53 = vpop.eup %1727 }
0x101d   :  { %v1097_v54 = vmul.f32 %v1728_v53, %v1726_v52 }
0x101f   :  { %1099 = vrot.lane.b32.xlu1 %v1097_v54, %s1801_s5 }
0x1091   :  { %v1100_v55 = vpop.permute.xlu1 %1099 }
0x1092   :  { %1103 = vst.msk [vmem:[#allocation2 + $0x38] sm:$0xff] %vm161_vm3, %v1100_v55  ;;  %1524 = vmatmul.mubr.msk.f32.vlgmr.msra.gmra.mxu0 %vm161_vm3, %v1100_v55 }
0x1093   :  { %1598 = vmatpush3.msra.mxu0 %v1327_v4  ;;  %1613 = vmatprep.mubr.msk.f32.mxu0 %vm161_vm3, %v1310_v10 }
0x1094   :  { %1599 = vmatprep.subr.mxu0 %v1326_v56 }
0x1095   :  { %1600 = vmatpush3.msra.mxu0 %v1326_v56 }
0x1096   :  { %1601 = vmatprep.subr.mxu0 %v1325_v11 }
0x1097   :  { %1602 = vmatpush3.msra.mxu0 %v1325_v11 }
0x1098   :  { %1603 = vmatprep.subr.mxu0 %v1324_v12 }
0x1099   :  { %1604 = vmatpush3.msra.mxu0 %v1324_v12  ;;  %v1317_v22 = vld [vmem:[#allocation2 + $0x38] sm:$0xff] }
0x109a   :  { %1605 = vmatprep.subr.mxu0 %v1323_v13 }
0x109b   :  { %1606 = vmatpush3.msra.mxu0 %v1323_v13 }
0x109c   :  { %1607 = vmatprep.subr.mxu0 %v1322_v14 }
0x109d   :  { %1608 = vmatpush3.msra.mxu0 %v1322_v14 }
0x109e   :  { %1609 = vmatprep.subr.mxu0 %v1321_v15 }
0x109f   :  { %1610 = vmatpush3.msra.mxu0 %v1321_v15 }
0x10a0   :  { %1611 = vmatprep.subr.mxu0 %v1320_v16 }
0x10a1   :  { %1612 = vmatpush3.msra.mxu0 %v1320_v16 }
0x10a2   :  { %1614 = vmatmul.mubr.msk.f32.vlgmr.msra.gmra.mxu0 %vm161_vm3, %v1311_v17 }
0x10a3   :  { %1616 = vmatprep.mubr.msk.f32.mxu0 %vm161_vm3, %v1312_v18 }
0x10a6   :  { %1617 = vmatmul.mubr.msk.f32.gmra.mxu0 %vm161_vm3, %v1313_v19 }
0x10a7   :  { %1619 = vmatprep.mubr.msk.f32.mxu0 %vm161_vm3, %v1314_v20 }
0x10aa   :  { %1620 = vmatmul.mubr.msk.f32.gmra.mxu0 %vm161_vm3, %v1315_v57 }
0x10ab   :  { %1622 = vmatprep.mubr.msk.f32.mxu0 %vm161_vm3, %v1316_v21 }
0x10ae   :  { %1623 = vmatmul.mubr.msk.f32.gmra.mxu0 %vm161_vm3, %v1317_v22 }
0x1152   :  { %v1172_v23 = vpop.f32.mrf.mxu0 }
0x1153   :  { %v1177_v24 = vadd.f32 %v1172_v23, %v1964_v46 }
0x1154   :  { %v1174_v26 = vpop.f32.mrf.mxu0 }
0x1155   :  { %v1525_v25 = vmul.f32 -1.442695, %v1177_v24  ;;  %v1178_v28 = vadd.f32 %v1174_v26, %v1967_v51 }
0x1157   :  { %1729 = vpow2.f32 %v1525_v25  ;;  %v1526_v58 = vmul.f32 -1.442695, %v1178_v28 }
0x1158   :  { %1731 = vtanh.f32 %v1178_v28 }
0x1162   :  { %v1615_v29 = vpop.f32.mrf.mxu0 }
0x1163   :  { %v1437_v30 = vadd.f32 %v1615_v29, %v2287_v27 }
0x1164   :  { %v1730_v31 = vpop.eup %1729  ;;  %v1431_v32 = vpop.f32.mrf.mxu0 }
0x1165   :  { %v1182_v33 = vadd.f32 1.0, %v1730_v31  ;;  %1481 = vst [vmem:[%s2352_s10 + $0x8] sm:$0xff] %v1437_v30  ;;  %v1432_v34 = vadd.f32 %v2287_v27, %v1431_v32  ;;  %v1732_v48 = vpop.eup %1731 }
0x1166   :  { %v1618_v35 = vpop.f32.mrf.mxu0 }
0x1167   :  { %1733 = vrcp.f32 %v1182_v33  ;;  %1480 = vst [vmem:[%s2352_s10] sm:$0xff] %v1432_v34  ;;  %v1447_v36 = vadd.f32 %v1618_v35, %v2287_v27 }
0x1168   :  { %v1441_v37 = vpop.f32.mrf.mxu0  ;;  %1735 = vpow2.f32 %v1526_v58 }
0x1169   :  { %1483 = vst [vmem:[%s2352_s10 + $0x18] sm:$0xff] %v1447_v36  ;;  %v1442_v38 = vadd.f32 %v2287_v27, %v1441_v37 }
0x116a   :  { %v1621_v39 = vpop.f32.mrf.mxu0 }
0x116b   :  { %1482 = vst [vmem:[%s2352_s10 + $0x10] sm:$0xff] %v1442_v38  ;;  %v1457_v40 = vadd.f32 %v1621_v39, %v2287_v27 }
0x116c   :  { %v1451_v41 = vpop.f32.mrf.mxu0 }
0x116d   :  { %1485 = vst [vmem:[%s2352_s10 + $0x28] sm:$0xff] %v1457_v40  ;;  %v1452_v42 = vadd.f32 %v2287_v27, %v1451_v41 }
0x116e   :  { %v1624_v43 = vpop.f32.mrf.mxu0 }
0x116f   :  { %1484 = vst [vmem:[%s2352_s10 + $0x20] sm:$0xff] %v1452_v42  ;;  %v1467_v44 = vadd.f32 %v1624_v43, %v2287_v27 }
0x1170   :  { %v1461_v45 = vpop.f32.mrf.mxu0 }
0x1171   :  { %1487 = vst [vmem:[%s2352_s10 + $0x38] sm:$0xff] %v1467_v44  ;;  %v1462_v47 = vadd.f32 %v2287_v27, %v1461_v45 }
0x1173   :  { %1486 = vst [vmem:[%s2352_s10 + $0x30] sm:$0xff] %v1462_v47 }
0x1174   :  { %v1734_v49 = vpop.eup %1733 }
0x1175   :  { %v1193_v0 = vmul.f32 %v1734_v49, %v1732_v48  ;;  %v1736_v59 = vpop.eup %1735  ;;  %v1192_v61 = vmul.f32 %v1734_v49, %v2248_v50 }
0x1176   :  { %v1189_v60 = vadd.f32 1.0, %v1736_v59 }
0x1177   :  { %1195 = vrot.lane.b32.xlu0 %v1193_v0, %s1801_s5 }
0x1178   :  { %1737 = vrcp.f32 %v1189_v60 }
0x1185   :  { %v1738_v1 = vpop.eup %1737 }
0x11e9   :  { %v1196_v62 = vpop.permute.xlu0 %1195 }
0x11ea   :  { %v1198_v63 = vadd.f32 %v1196_v62, %v1192_v61 }
0x11ec   :  { %1739 = vtanh.f32 %v1198_v63 }
0x11f9   :  { %v1740_v2 = vpop.eup %1739 }
0x11fa   :  { %v1200_v3 = vmul.f32 %v1740_v2, %v1738_v1 }
0x11fc   :  { %1202 = vrot.lane.b32.xlu1 %v1200_v3, %s1801_s5 }
0x126e   :  { %v1203_v4 = vpop.permute.xlu1 %1202 }
0x126f   :  { %1206 = vst.msk [vmem:[#allocation2 + $0x40] sm:$0xff] %vm161_vm3, %v1203_v4  ;;  %1527 = vmatmul.mubr.msk.f32.vlgmr.msra.gmra.mxu1 %vm161_vm3, %v1203_v4 }
0x1276   :  { %v1318_v5 = vld [vmem:[#allocation2 + $0x40] sm:$0xff] }
0x1277   :  { %1625 = vmatprep.mubr.msk.f32.mxu0 %vm161_vm3, %v1318_v5 }
0x132f   :  { %v1275_v6 = vpop.f32.mrf.mxu1 }
0x1330   :  { %v1280_v7 = vadd.f32 %v1275_v6, %v1964_v46 }
0x1331   :  { %v1277_v9 = vpop.f32.mrf.mxu1 }
0x1332   :  { %v1528_v8 = vmul.f32 -1.442695, %v1280_v7  ;;  %v1281_v50 = vadd.f32 %v1277_v9, %v1967_v51 }
0x1334   :  { %1741 = vpow2.f32 %v1528_v8  ;;  %v1529_v10 = vmul.f32 -1.442695, %v1281_v50 }
0x1335   :  { %1743 = vtanh.f32 %v1281_v50 }
0x1341   :  { %v1742_v52 = vpop.eup %1741 }
0x1342   :  { %v1285_v53 = vadd.f32 1.0, %v1742_v52  ;;  %v1744_v54 = vpop.eup %1743 }
0x1344   :  { %1745 = vrcp.f32 %v1285_v53 }
0x1345   :  { %1747 = vpow2.f32 %v1529_v10 }
0x1351   :  { %v1746_v55 = vpop.eup %1745 }
0x1352   :  { %v1296_v56 = vmul.f32 %v1746_v55, %v1744_v54  ;;  %v1748_v11 = vpop.eup %1747  ;;  %v1295_v13 = vmul.f32 %v1746_v55, %v1198_v63 }
0x1353   :  { %v1292_v12 = vadd.f32 1.0, %v1748_v11 }
0x1354   :  { %1298 = vrot.lane.b32.xlu0 %v1296_v56, %s1801_s5 }
0x1355   :  { %1749 = vrcp.f32 %v1292_v12 }
0x1362   :  { %v1750_v15 = vpop.eup %1749 }
0x13c6   :  { %v1299_v46 = vpop.permute.xlu0 %1298 }
0x13c7   :  { %v1301_v14 = vadd.f32 %v1299_v46, %v1295_v13 }
0x13c9   :  { %1751 = vtanh.f32 %v1301_v14 }
0x13d6   :  { %v1752_v51 = vpop.eup %1751 }
0x13d7   :  { %v1303_v16 = vmul.f32 %v1752_v51, %v1750_v15 }
0x13d9   :  { %1305 = vrot.lane.b32.xlu1 %v1303_v16, %s1801_s5 }
0x144b   :  { %v1306_v17 = vpop.permute.xlu1 %1305 }
0x144c   :  { %1309 = vst.msk [vmem:[#allocation2 + $0x48] sm:$0xff] %vm161_vm3, %v1306_v17 }
0x1453   :  { %v1319_v18 = vld [vmem:[#allocation2 + $0x48] sm:$0xff] }
0x1454   :  { %1626 = vmatmul.mubr.msk.f32.gmra.mxu0 %vm161_vm3, %v1319_v18 }
0x1514   :  { %v1627_v19 = vpop.f32.mrf.mxu0 }
0x1515   :  { %v1477_v20 = vadd.f32 %v1627_v19, %v2287_v27 }
0x1516   :  { %v1471_v57 = vpop.f32.mrf.mxu0 }
0x1517   :  { %1489 = vst [vmem:[%s2352_s10 + $0x48] sm:$0xff] %v1477_v20  ;;  %v1472_v21 = vadd.f32 %v2287_v27, %v1471_v57 }
0x1519   :  { %1488 = vst [vmem:[%s2352_s10 + $0x40] sm:$0xff] %v1472_v21 }
0x151a   :  { %1494 = vsyncpa [#allocation4], 1 }
0x151b   :  { %1495 = vsyncpa [#allocation6], 1 }

</bundles_post_ra>
